<compile_context>
chip_gen: v7x
topology: tpu7x:2x2x1
jax: 0.10.0
libtpu: 0.0.40
codegen_flags: <defaults>
</compile_context>

<pallas_src>
import functools

import jax
import jax.numpy as jnp
import numpy as np
from jax.experimental import pallas as pl
from jax.experimental.pallas import tpu as pltpu


def wavenet_kernel(x_ref, wd_ref, w1_ref, wm_ref, b1_ref, scal_ref, out_ref,
                   *, mods, dils, gate_dtype):
    """Full Wavenet forward in one gridless invocation.

    x_ref   : (C, B*T_pad)   VMEM  right-aligned, zero front-padded input
    wd_ref  : (8, 10, 2C)    VMEM  fused dilated-conv weights (tap0 | tap1)
    w1_ref  : (10, 8)        VMEM  per-module 1x1 conv weights (module along lanes)
    wm_ref  : (B*T_pad, B)   VMEM  Linear(42,1) weight scattered into each batch
                                   segment's last-42 lanes (zeros elsewhere)
    b1_ref  : (8,)           SMEM  per-module 1x1 conv bias
    scal_ref: (3,)           SMEM  [final conv_1x1 weight, its bias, linear bias]
    out_ref : (1, B)         VMEM  output, B along lanes
    """
    C, N = x_ref.shape
    wc = scal_ref[0]
    bc = scal_ref[1]
    bl = scal_ref[2]

    xb = x_ref[...]                                   # (C, N) f32
    acc = jnp.zeros((1, N), jnp.float32)              # running skip-connection sum

    for m, d in zip(mods, dils):                      # 11 module applications (static unroll)
        # Dilated conv taps at fixed padded width: tap1 (= x[t+d]) is xb itself,
        # tap0 (= x[t]) is a lane-rotate by +d.  The rotation wrap only touches the
        # invalid front region, never the valid window.
        tap0 = pltpu.roll(xb, d, axis=1)              # (C, N)
        xcat = jnp.concatenate([tap0, xb], axis=0)    # (2C, N), register-resident
        # One weight-stationary MXU contraction per module (batch folded into N).
        y = jax.lax.dot_general(
            wd_ref[m], xcat,
            dimension_numbers=(((1,), (0,)), ((), ())),
            preferred_element_type=jnp.float32)       # (10, N)
        # Gated activation (EUP).  gate_dtype=bfloat16 is the v6e/v7x option.
        yg = y.astype(gate_dtype)
        g = (jnp.tanh(yg) * jax.nn.sigmoid(yg)).astype(jnp.float32)   # (10, N)
        # Per-module 1x1 conv (10 -> 1, bias): VPU broadcast-multiply + sublane reduce.
        skip = jnp.sum(w1_ref[:, m:m + 1] * g, axis=0, keepdims=True) + b1_ref[m]  # (1, N)
        # Residual: x_skip + x_old[:, :, -t_out:]  ==  skip + xb (same lanes, right-aligned).
        xb = skip + xb                                # (1,N)+(C,N) -> (C,N)
        # Skip accumulation over the full padded width; every module's "last 42"
        # occupies the SAME fixed lane window, selected by wm_ref at the end.
        acc = acc + skip

    # Final 1x1 conv (1 -> 1, bias): scalar affine on the accumulator.
    xs = wc * acc + bc                                # (1, N)
    # Linear(42, 1): one (1,N)x(N,B) dot; wm zeros everything outside each batch's
    # valid last-42 window (including the bc contribution there).
    out = jax.lax.dot_general(
        xs, wm_ref[...],
        dimension_numbers=(((1,), (0,)), ((), ())),
        preferred_element_type=jnp.float32)           # (1, B)
    out_ref[...] = out + bl


def wavenet_forward(x, wd0, wd1, w1, b1, wc, bc, wl, bl, *, dilation,
                    gate_dtype=jnp.float32):
    B, C, T = x.shape
    # Module application order from Wavenet.forward: Mod1..Mod5 once, Mod6/7/8 twice.
    mods = (0, 1, 2, 3, 4, 5, 5, 6, 6, 7, 7)
    per_mod_dil = [dilation ** (i + 1) for i in range(8)]
    dils = tuple(per_mod_dil[m] for m in mods)
    t_final = T - sum(dils)
    assert t_final == 42, f"Linear(42,1) requires T - sum(dilations) == 42, got {t_final}"

    f32 = jnp.float32
    t_pad = max(128, ((T + 127) // 128) * 128)        # lane-dense padded time
    pad0 = t_pad - T
    n = B * t_pad

    # Right-aligned, zero front-padded, batch folded into lanes: (C, B*T_pad).
    xt = jnp.transpose(x.astype(f32), (1, 0, 2))      # (C, B, T)
    xp = jnp.pad(xt, ((0, 0), (0, 0), (pad0, 0)))     # (C, B, T_pad)
    x_flat = xp.reshape(C, n)

    # Fuse the two conv taps into one (10, 2C) weight per module.
    wd_cat = jnp.concatenate([wd0, wd1], axis=2).astype(f32)        # (8, 10, 2C)
    # Per-module 1x1 conv weights, module index along lanes.
    w1_t = w1.astype(f32).reshape(8, 10).T                           # (10, 8)
    # Final Linear weight scattered into each batch segment's last-42 lanes.
    wl_col = jnp.pad(wl.astype(f32).reshape(t_final), (t_pad - t_final, 0))  # (T_pad,)
    wm = jnp.zeros((B, t_pad, B), f32)
    for b in range(B):
        wm = wm.at[b, :, b].set(wl_col)
    wm = wm.reshape(n, B)                                            # (B*T_pad, B)
    scal = jnp.stack([jnp.asarray(wc), jnp.asarray(bc), jnp.asarray(bl)]).astype(f32)

    vm = pl.BlockSpec(memory_space=pltpu.MemorySpace.VMEM)
    sm = pl.BlockSpec(memory_space=pltpu.MemorySpace.SMEM)

    # Gridless single-TC invocation: total VMEM footprint << 1 MiB on every
    # generation.  If B grows, add grid=(B//bb,) with
    # dimension_semantics=("parallel",) to engage the second TensorCore on v7x.
    out = pl.pallas_call(
        functools.partial(wavenet_kernel, mods=mods, dils=dils, gate_dtype=gate_dtype),
        out_shape=jax.ShapeDtypeStruct((1, B), f32),
        in_specs=[vm, vm, vm, vm, sm, sm],
        out_specs=vm,
    )(x_flat, wd_cat, w1_t, wm, b1.astype(f32), scal)
    return out.reshape(B, 1)


def wavenet_reference(x, wd0, wd1, w1, b1, wc, bc, wl, bl, *, dilation):
    """Pure-JAX reference matching the PyTorch forward semantics."""
    mods = [0, 1, 2, 3, 4, 5, 5, 6, 6, 7, 7]
    per_mod_dil = [dilation ** (i + 1) for i in range(8)]
    xb = x
    skips = []
    for m in mods:
        dil = per_mod_dil[m]
        t_out = xb.shape[2] - dil
        x0 = xb[:, :, :t_out]
        x1 = xb[:, :, dil:]
        y = (jnp.einsum('oc,bct->bot', wd0[m], x0)
             + jnp.einsum('oc,bct->bot', wd1[m], x1))
        g = jnp.tanh(y) * jax.nn.sigmoid(y)
        skip = jnp.einsum('po,bot->bpt', w1[m], g) + b1[m]
        xb = skip + x1
        skips.append(skip)
    t_final = skips[-1].shape[2]
    xs = skips[-1]
    for s in skips[:-1]:
        xs = xs + s[:, :, s.shape[2] - t_final:]
    xs = wc * xs + bc
    out = jnp.einsum('bpt,qt->bpq', xs, wl)[:, :, 0] + bl     # (B, 1)
    return out


if __name__ == "__main__":
    B, C = 2, 4
    DILATION = 1
    # T must satisfy T - sum(dilations) == 42 (the Linear(42,1) input size).
    # With dilation=1 that sum is 11 -> T = 53.  (dilation=2 gives the original 1000.)
    T = 53

    key = jax.random.PRNGKey(0)
    ks = jax.random.split(key, 8)

    # Deterministic synthetic parameters (shapes from the PyTorch __init__).
    wd = 0.3 * jax.random.normal(ks[0], (8, 10, C, 2), jnp.float32)   # Conv1d(C,10,k=2) x 8
    wd0, wd1 = wd[..., 0], wd[..., 1]
    w1 = 0.3 * jax.random.normal(ks[1], (8, 1, 10), jnp.float32)      # Conv1d(10,1,k=1) weight x 8
    b1 = 0.1 * jax.random.normal(ks[2], (8,), jnp.float32)            # its bias x 8
    wc = 0.3 * jax.random.normal(ks[3], (), jnp.float32)              # final Conv1d(1,1,k=1) weight
    bc = 0.1 * jax.random.normal(ks[4], (), jnp.float32)              # final Conv1d bias
    wl = 0.3 * jax.random.normal(ks[5], (1, 42), jnp.float32)         # Linear(42,1) weight
    bl = 0.1 * jax.random.normal(ks[6], (), jnp.float32)              # Linear bias

    x = jax.random.normal(ks[7], (B, C, T), jnp.float32)

    # gate_dtype=jnp.bfloat16 is the documented v6e/v7x speedup for the tanh/sigmoid
    # gate; kept at f32 here (required on v5e, and keeps the tolerance check tight).
    out = wavenet_forward(x, wd0, wd1, w1, b1, wc, bc, wl, bl, dilation=DILATION)
    out = jax.block_until_ready(out)

    ref = wavenet_reference(x, wd0, wd1, w1, b1, wc, bc, wl, bl, dilation=DILATION)
    ref = jax.block_until_ready(ref)

    assert out.shape == (B, 1), out.shape
    np.testing.assert_allclose(np.asarray(out), np.asarray(ref), rtol=1e-2, atol=1e-2)
    print("KERNEL_OK")
</pallas_src>

<mosaic_0001>
module attributes {stable_mosaic.version = 11 : i64} {
  func.func @wavenet_kernel(%arg0: memref<4x256xf32, #tpu.memory_space<vmem>>, %arg1: memref<8x10x8xf32, #tpu.memory_space<vmem>>, %arg2: memref<10x8xf32, #tpu.memory_space<vmem>>, %arg3: memref<256x2xf32, #tpu.memory_space<vmem>>, %arg4: memref<8xf32, #tpu.memory_space<smem>>, %arg5: memref<3xf32, #tpu.memory_space<smem>>, %arg6: memref<1x2xf32, #tpu.memory_space<vmem>>) attributes {dimension_semantics = [], scalar_prefetch = 0 : i64, scratch_operands = 0 : i64, tpu.core_type = #tpu.core_type<tc>} {
    %c0 = arith.constant 0 : index
    %0 = memref.load %arg5[%c0] : memref<3xf32, #tpu.memory_space<smem>>
    %c1 = arith.constant 1 : index
    %1 = memref.load %arg5[%c1] : memref<3xf32, #tpu.memory_space<smem>>
    %c2 = arith.constant 2 : index
    %2 = memref.load %arg5[%c2] : memref<3xf32, #tpu.memory_space<smem>>
    %c0_0 = arith.constant 0 : index
    %c0_1 = arith.constant 0 : index
    %3 = vector.load %arg0[%c0_0, %c0_1] : memref<4x256xf32, #tpu.memory_space<vmem>>, vector<4x256xf32>
    %cst = arith.constant 0.000000e+00 : f32
    %4 = vector.broadcast %cst : f32 to vector<1x256xf32>
    %c1_i32 = arith.constant 1 : i32
    %5 = tpu.dynamic_rotate %3 by %c1_i32 dim 1 : vector<4x256xf32>, i32 -> vector<4x256xf32>
    %6 = tpu.concatenate %5, %3 in 0 : vector<4x256xf32>, vector<4x256xf32> -> vector<8x256xf32>
    %c0_2 = arith.constant 0 : index
    %c0_3 = arith.constant 0 : index
    %c0_4 = arith.constant 0 : index
    %7 = vector.load %arg1[%c0_2, %c0_3, %c0_4] : memref<8x10x8xf32, #tpu.memory_space<vmem>>, vector<1x10x8xf32>
    %8 = vector.shape_cast %7 : vector<1x10x8xf32> to vector<10x8xf32>
    %cst_5 = arith.constant dense<0.000000e+00> : vector<10x256xf32>
    %9 = tpu.matmul %8, %6, %cst_5 {dimension_numbers = #tpu.dot_dimension_numbers<[1], [0], [0], [1], [0, 0, 1, 1], [], []>} : vector<10x8xf32>, vector<8x256xf32>, vector<10x256xf32> -> vector<10x256xf32>
    %10 = math.tanh %9 : vector<10x256xf32>
    %11 = arith.negf %9 : vector<10x256xf32>
    %12 = math.exp %11 : vector<10x256xf32>
    %cst_6 = arith.constant 1.000000e+00 : f32
    %13 = vector.broadcast %cst_6 : f32 to vector<10x256xf32>
    %14 = arith.addf %13, %12 : vector<10x256xf32>
    %15 = arith.divf %13, %14 : vector<10x256xf32>
    %16 = arith.mulf %10, %15 : vector<10x256xf32>
    %c0_7 = arith.constant 0 : index
    %c0_8 = arith.constant 0 : index
    %17 = vector.load %arg2[%c0_7, %c0_8] : memref<10x8xf32, #tpu.memory_space<vmem>>, vector<10x1xf32>
    %18 = vector.broadcast %17 : vector<10x1xf32> to vector<10x256xf32>
    %19 = arith.mulf %18, %16 : vector<10x256xf32>
    %cst_9 = arith.constant dense<0.000000e+00> : vector<256xf32>
    %20 = vector.multi_reduction <add>, %19, %cst_9 [0] : vector<10x256xf32> to vector<256xf32>
    %21 = vector.shape_cast %20 : vector<256xf32> to vector<1x256xf32>
    %c0_10 = arith.constant 0 : index
    %22 = memref.load %arg4[%c0_10] : memref<8xf32, #tpu.memory_space<smem>>
    %23 = vector.broadcast %22 : f32 to vector<1x256xf32>
    %24 = arith.addf %21, %23 : vector<1x256xf32>
    %25 = vector.broadcast %24 : vector<1x256xf32> to vector<4x256xf32>
    %26 = arith.addf %25, %3 : vector<4x256xf32>
    %27 = arith.addf %4, %24 : vector<1x256xf32>
    %c1_i32_11 = arith.constant 1 : i32
    %28 = tpu.dynamic_rotate %26 by %c1_i32_11 dim 1 : vector<4x256xf32>, i32 -> vector<4x256xf32>
    %29 = tpu.concatenate %28, %26 in 0 : vector<4x256xf32>, vector<4x256xf32> -> vector<8x256xf32>
    %c1_12 = arith.constant 1 : index
    %c0_13 = arith.constant 0 : index
    %c0_14 = arith.constant 0 : index
    %30 = vector.load %arg1[%c1_12, %c0_13, %c0_14] : memref<8x10x8xf32, #tpu.memory_space<vmem>>, vector<1x10x8xf32>
    %31 = vector.shape_cast %30 : vector<1x10x8xf32> to vector<10x8xf32>
    %cst_15 = arith.constant dense<0.000000e+00> : vector<10x256xf32>
    %32 = tpu.matmul %31, %29, %cst_15 {dimension_numbers = #tpu.dot_dimension_numbers<[1], [0], [0], [1], [0, 0, 1, 1], [], []>} : vector<10x8xf32>, vector<8x256xf32>, vector<10x256xf32> -> vector<10x256xf32>
    %33 = math.tanh %32 : vector<10x256xf32>
    %34 = arith.negf %32 : vector<10x256xf32>
    %35 = math.exp %34 : vector<10x256xf32>
    %cst_16 = arith.constant 1.000000e+00 : f32
    %36 = vector.broadcast %cst_16 : f32 to vector<10x256xf32>
    %37 = arith.addf %36, %35 : vector<10x256xf32>
    %38 = arith.divf %36, %37 : vector<10x256xf32>
    %39 = arith.mulf %33, %38 : vector<10x256xf32>
    %c0_17 = arith.constant 0 : index
    %c1_18 = arith.constant 1 : index
    %40 = vector.load %arg2[%c0_17, %c1_18] : memref<10x8xf32, #tpu.memory_space<vmem>>, vector<10x1xf32>
    %41 = vector.broadcast %40 : vector<10x1xf32> to vector<10x256xf32>
    %42 = arith.mulf %41, %39 : vector<10x256xf32>
    %cst_19 = arith.constant dense<0.000000e+00> : vector<256xf32>
    %43 = vector.multi_reduction <add>, %42, %cst_19 [0] : vector<10x256xf32> to vector<256xf32>
    %44 = vector.shape_cast %43 : vector<256xf32> to vector<1x256xf32>
    %c1_20 = arith.constant 1 : index
    %45 = memref.load %arg4[%c1_20] : memref<8xf32, #tpu.memory_space<smem>>
    %46 = vector.broadcast %45 : f32 to vector<1x256xf32>
    %47 = arith.addf %44, %46 : vector<1x256xf32>
    %48 = vector.broadcast %47 : vector<1x256xf32> to vector<4x256xf32>
    %49 = arith.addf %48, %26 : vector<4x256xf32>
    %50 = arith.addf %27, %47 : vector<1x256xf32>
    %c1_i32_21 = arith.constant 1 : i32
    %51 = tpu.dynamic_rotate %49 by %c1_i32_21 dim 1 : vector<4x256xf32>, i32 -> vector<4x256xf32>
    %52 = tpu.concatenate %51, %49 in 0 : vector<4x256xf32>, vector<4x256xf32> -> vector<8x256xf32>
    %c2_22 = arith.constant 2 : index
    %c0_23 = arith.constant 0 : index
    %c0_24 = arith.constant 0 : index
    %53 = vector.load %arg1[%c2_22, %c0_23, %c0_24] : memref<8x10x8xf32, #tpu.memory_space<vmem>>, vector<1x10x8xf32>
    %54 = vector.shape_cast %53 : vector<1x10x8xf32> to vector<10x8xf32>
    %cst_25 = arith.constant dense<0.000000e+00> : vector<10x256xf32>
    %55 = tpu.matmul %54, %52, %cst_25 {dimension_numbers = #tpu.dot_dimension_numbers<[1], [0], [0], [1], [0, 0, 1, 1], [], []>} : vector<10x8xf32>, vector<8x256xf32>, vector<10x256xf32> -> vector<10x256xf32>
    %56 = math.tanh %55 : vector<10x256xf32>
    %57 = arith.negf %55 : vector<10x256xf32>
    %58 = math.exp %57 : vector<10x256xf32>
    %cst_26 = arith.constant 1.000000e+00 : f32
    %59 = vector.broadcast %cst_26 : f32 to vector<10x256xf32>
    %60 = arith.addf %59, %58 : vector<10x256xf32>
    %61 = arith.divf %59, %60 : vector<10x256xf32>
    %62 = arith.mulf %56, %61 : vector<10x256xf32>
    %c0_27 = arith.constant 0 : index
    %c2_28 = arith.constant 2 : index
    %63 = vector.load %arg2[%c0_27, %c2_28] : memref<10x8xf32, #tpu.memory_space<vmem>>, vector<10x1xf32>
    %64 = vector.broadcast %63 : vector<10x1xf32> to vector<10x256xf32>
    %65 = arith.mulf %64, %62 : vector<10x256xf32>
    %cst_29 = arith.constant dense<0.000000e+00> : vector<256xf32>
    %66 = vector.multi_reduction <add>, %65, %cst_29 [0] : vector<10x256xf32> to vector<256xf32>
    %67 = vector.shape_cast %66 : vector<256xf32> to vector<1x256xf32>
    %c2_30 = arith.constant 2 : index
    %68 = memref.load %arg4[%c2_30] : memref<8xf32, #tpu.memory_space<smem>>
    %69 = vector.broadcast %68 : f32 to vector<1x256xf32>
    %70 = arith.addf %67, %69 : vector<1x256xf32>
    %71 = vector.broadcast %70 : vector<1x256xf32> to vector<4x256xf32>
    %72 = arith.addf %71, %49 : vector<4x256xf32>
    %73 = arith.addf %50, %70 : vector<1x256xf32>
    %c1_i32_31 = arith.constant 1 : i32
    %74 = tpu.dynamic_rotate %72 by %c1_i32_31 dim 1 : vector<4x256xf32>, i32 -> vector<4x256xf32>
    %75 = tpu.concatenate %74, %72 in 0 : vector<4x256xf32>, vector<4x256xf32> -> vector<8x256xf32>
    %c3 = arith.constant 3 : index
    %c0_32 = arith.constant 0 : index
    %c0_33 = arith.constant 0 : index
    %76 = vector.load %arg1[%c3, %c0_32, %c0_33] : memref<8x10x8xf32, #tpu.memory_space<vmem>>, vector<1x10x8xf32>
    %77 = vector.shape_cast %76 : vector<1x10x8xf32> to vector<10x8xf32>
    %cst_34 = arith.constant dense<0.000000e+00> : vector<10x256xf32>
    %78 = tpu.matmul %77, %75, %cst_34 {dimension_numbers = #tpu.dot_dimension_numbers<[1], [0], [0], [1], [0, 0, 1, 1], [], []>} : vector<10x8xf32>, vector<8x256xf32>, vector<10x256xf32> -> vector<10x256xf32>
    %79 = math.tanh %78 : vector<10x256xf32>
    %80 = arith.negf %78 : vector<10x256xf32>
    %81 = math.exp %80 : vector<10x256xf32>
    %cst_35 = arith.constant 1.000000e+00 : f32
    %82 = vector.broadcast %cst_35 : f32 to vector<10x256xf32>
    %83 = arith.addf %82, %81 : vector<10x256xf32>
    %84 = arith.divf %82, %83 : vector<10x256xf32>
    %85 = arith.mulf %79, %84 : vector<10x256xf32>
    %c0_36 = arith.constant 0 : index
    %c3_37 = arith.constant 3 : index
    %86 = vector.load %arg2[%c0_36, %c3_37] : memref<10x8xf32, #tpu.memory_space<vmem>>, vector<10x1xf32>
    %87 = vector.broadcast %86 : vector<10x1xf32> to vector<10x256xf32>
    %88 = arith.mulf %87, %85 : vector<10x256xf32>
    %cst_38 = arith.constant dense<0.000000e+00> : vector<256xf32>
    %89 = vector.multi_reduction <add>, %88, %cst_38 [0] : vector<10x256xf32> to vector<256xf32>
    %90 = vector.shape_cast %89 : vector<256xf32> to vector<1x256xf32>
    %c3_39 = arith.constant 3 : index
    %91 = memref.load %arg4[%c3_39] : memref<8xf32, #tpu.memory_space<smem>>
    %92 = vector.broadcast %91 : f32 to vector<1x256xf32>
    %93 = arith.addf %90, %92 : vector<1x256xf32>
    %94 = vector.broadcast %93 : vector<1x256xf32> to vector<4x256xf32>
    %95 = arith.addf %94, %72 : vector<4x256xf32>
    %96 = arith.addf %73, %93 : vector<1x256xf32>
    %c1_i32_40 = arith.constant 1 : i32
    %97 = tpu.dynamic_rotate %95 by %c1_i32_40 dim 1 : vector<4x256xf32>, i32 -> vector<4x256xf32>
    %98 = tpu.concatenate %97, %95 in 0 : vector<4x256xf32>, vector<4x256xf32> -> vector<8x256xf32>
    %c4 = arith.constant 4 : index
    %c0_41 = arith.constant 0 : index
    %c0_42 = arith.constant 0 : index
    %99 = vector.load %arg1[%c4, %c0_41, %c0_42] : memref<8x10x8xf32, #tpu.memory_space<vmem>>, vector<1x10x8xf32>
    %100 = vector.shape_cast %99 : vector<1x10x8xf32> to vector<10x8xf32>
    %cst_43 = arith.constant dense<0.000000e+00> : vector<10x256xf32>
    %101 = tpu.matmul %100, %98, %cst_43 {dimension_numbers = #tpu.dot_dimension_numbers<[1], [0], [0], [1], [0, 0, 1, 1], [], []>} : vector<10x8xf32>, vector<8x256xf32>, vector<10x256xf32> -> vector<10x256xf32>
    %102 = math.tanh %101 : vector<10x256xf32>
    %103 = arith.negf %101 : vector<10x256xf32>
    %104 = math.exp %103 : vector<10x256xf32>
    %cst_44 = arith.constant 1.000000e+00 : f32
    %105 = vector.broadcast %cst_44 : f32 to vector<10x256xf32>
    %106 = arith.addf %105, %104 : vector<10x256xf32>
    %107 = arith.divf %105, %106 : vector<10x256xf32>
    %108 = arith.mulf %102, %107 : vector<10x256xf32>
    %c0_45 = arith.constant 0 : index
    %c4_46 = arith.constant 4 : index
    %109 = vector.load %arg2[%c0_45, %c4_46] : memref<10x8xf32, #tpu.memory_space<vmem>>, vector<10x1xf32>
    %110 = vector.broadcast %109 : vector<10x1xf32> to vector<10x256xf32>
    %111 = arith.mulf %110, %108 : vector<10x256xf32>
    %cst_47 = arith.constant dense<0.000000e+00> : vector<256xf32>
    %112 = vector.multi_reduction <add>, %111, %cst_47 [0] : vector<10x256xf32> to vector<256xf32>
    %113 = vector.shape_cast %112 : vector<256xf32> to vector<1x256xf32>
    %c4_48 = arith.constant 4 : index
    %114 = memref.load %arg4[%c4_48] : memref<8xf32, #tpu.memory_space<smem>>
    %115 = vector.broadcast %114 : f32 to vector<1x256xf32>
    %116 = arith.addf %113, %115 : vector<1x256xf32>
    %117 = vector.broadcast %116 : vector<1x256xf32> to vector<4x256xf32>
    %118 = arith.addf %117, %95 : vector<4x256xf32>
    %119 = arith.addf %96, %116 : vector<1x256xf32>
    %c1_i32_49 = arith.constant 1 : i32
    %120 = tpu.dynamic_rotate %118 by %c1_i32_49 dim 1 : vector<4x256xf32>, i32 -> vector<4x256xf32>
    %121 = tpu.concatenate %120, %118 in 0 : vector<4x256xf32>, vector<4x256xf32> -> vector<8x256xf32>
    %c5 = arith.constant 5 : index
    %c0_50 = arith.constant 0 : index
    %c0_51 = arith.constant 0 : index
    %122 = vector.load %arg1[%c5, %c0_50, %c0_51] : memref<8x10x8xf32, #tpu.memory_space<vmem>>, vector<1x10x8xf32>
    %123 = vector.shape_cast %122 : vector<1x10x8xf32> to vector<10x8xf32>
    %cst_52 = arith.constant dense<0.000000e+00> : vector<10x256xf32>
    %124 = tpu.matmul %123, %121, %cst_52 {dimension_numbers = #tpu.dot_dimension_numbers<[1], [0], [0], [1], [0, 0, 1, 1], [], []>} : vector<10x8xf32>, vector<8x256xf32>, vector<10x256xf32> -> vector<10x256xf32>
    %125 = math.tanh %124 : vector<10x256xf32>
    %126 = arith.negf %124 : vector<10x256xf32>
    %127 = math.exp %126 : vector<10x256xf32>
    %cst_53 = arith.constant 1.000000e+00 : f32
    %128 = vector.broadcast %cst_53 : f32 to vector<10x256xf32>
    %129 = arith.addf %128, %127 : vector<10x256xf32>
    %130 = arith.divf %128, %129 : vector<10x256xf32>
    %131 = arith.mulf %125, %130 : vector<10x256xf32>
    %c0_54 = arith.constant 0 : index
    %c5_55 = arith.constant 5 : index
    %132 = vector.load %arg2[%c0_54, %c5_55] : memref<10x8xf32, #tpu.memory_space<vmem>>, vector<10x1xf32>
    %133 = vector.broadcast %132 : vector<10x1xf32> to vector<10x256xf32>
    %134 = arith.mulf %133, %131 : vector<10x256xf32>
    %cst_56 = arith.constant dense<0.000000e+00> : vector<256xf32>
    %135 = vector.multi_reduction <add>, %134, %cst_56 [0] : vector<10x256xf32> to vector<256xf32>
    %136 = vector.shape_cast %135 : vector<256xf32> to vector<1x256xf32>
    %c5_57 = arith.constant 5 : index
    %137 = memref.load %arg4[%c5_57] : memref<8xf32, #tpu.memory_space<smem>>
    %138 = vector.broadcast %137 : f32 to vector<1x256xf32>
    %139 = arith.addf %136, %138 : vector<1x256xf32>
    %140 = vector.broadcast %139 : vector<1x256xf32> to vector<4x256xf32>
    %141 = arith.addf %140, %118 : vector<4x256xf32>
    %142 = arith.addf %119, %139 : vector<1x256xf32>
    %c1_i32_58 = arith.constant 1 : i32
    %143 = tpu.dynamic_rotate %141 by %c1_i32_58 dim 1 : vector<4x256xf32>, i32 -> vector<4x256xf32>
    %144 = tpu.concatenate %143, %141 in 0 : vector<4x256xf32>, vector<4x256xf32> -> vector<8x256xf32>
    %c5_59 = arith.constant 5 : index
    %c0_60 = arith.constant 0 : index
    %c0_61 = arith.constant 0 : index
    %145 = vector.load %arg1[%c5_59, %c0_60, %c0_61] : memref<8x10x8xf32, #tpu.memory_space<vmem>>, vector<1x10x8xf32>
    %146 = vector.shape_cast %145 : vector<1x10x8xf32> to vector<10x8xf32>
    %cst_62 = arith.constant dense<0.000000e+00> : vector<10x256xf32>
    %147 = tpu.matmul %146, %144, %cst_62 {dimension_numbers = #tpu.dot_dimension_numbers<[1], [0], [0], [1], [0, 0, 1, 1], [], []>} : vector<10x8xf32>, vector<8x256xf32>, vector<10x256xf32> -> vector<10x256xf32>
    %148 = math.tanh %147 : vector<10x256xf32>
    %149 = arith.negf %147 : vector<10x256xf32>
    %150 = math.exp %149 : vector<10x256xf32>
    %cst_63 = arith.constant 1.000000e+00 : f32
    %151 = vector.broadcast %cst_63 : f32 to vector<10x256xf32>
    %152 = arith.addf %151, %150 : vector<10x256xf32>
    %153 = arith.divf %151, %152 : vector<10x256xf32>
    %154 = arith.mulf %148, %153 : vector<10x256xf32>
    %c0_64 = arith.constant 0 : index
    %c5_65 = arith.constant 5 : index
    %155 = vector.load %arg2[%c0_64, %c5_65] : memref<10x8xf32, #tpu.memory_space<vmem>>, vector<10x1xf32>
    %156 = vector.broadcast %155 : vector<10x1xf32> to vector<10x256xf32>
    %157 = arith.mulf %156, %154 : vector<10x256xf32>
    %cst_66 = arith.constant dense<0.000000e+00> : vector<256xf32>
    %158 = vector.multi_reduction <add>, %157, %cst_66 [0] : vector<10x256xf32> to vector<256xf32>
    %159 = vector.shape_cast %158 : vector<256xf32> to vector<1x256xf32>
    %c5_67 = arith.constant 5 : index
    %160 = memref.load %arg4[%c5_67] : memref<8xf32, #tpu.memory_space<smem>>
    %161 = vector.broadcast %160 : f32 to vector<1x256xf32>
    %162 = arith.addf %159, %161 : vector<1x256xf32>
    %163 = vector.broadcast %162 : vector<1x256xf32> to vector<4x256xf32>
    %164 = arith.addf %163, %141 : vector<4x256xf32>
    %165 = arith.addf %142, %162 : vector<1x256xf32>
    %c1_i32_68 = arith.constant 1 : i32
    %166 = tpu.dynamic_rotate %164 by %c1_i32_68 dim 1 : vector<4x256xf32>, i32 -> vector<4x256xf32>
    %167 = tpu.concatenate %166, %164 in 0 : vector<4x256xf32>, vector<4x256xf32> -> vector<8x256xf32>
    %c6 = arith.constant 6 : index
    %c0_69 = arith.constant 0 : index
    %c0_70 = arith.constant 0 : index
    %168 = vector.load %arg1[%c6, %c0_69, %c0_70] : memref<8x10x8xf32, #tpu.memory_space<vmem>>, vector<1x10x8xf32>
    %169 = vector.shape_cast %168 : vector<1x10x8xf32> to vector<10x8xf32>
    %cst_71 = arith.constant dense<0.000000e+00> : vector<10x256xf32>
    %170 = tpu.matmul %169, %167, %cst_71 {dimension_numbers = #tpu.dot_dimension_numbers<[1], [0], [0], [1], [0, 0, 1, 1], [], []>} : vector<10x8xf32>, vector<8x256xf32>, vector<10x256xf32> -> vector<10x256xf32>
    %171 = math.tanh %170 : vector<10x256xf32>
    %172 = arith.negf %170 : vector<10x256xf32>
    %173 = math.exp %172 : vector<10x256xf32>
    %cst_72 = arith.constant 1.000000e+00 : f32
    %174 = vector.broadcast %cst_72 : f32 to vector<10x256xf32>
    %175 = arith.addf %174, %173 : vector<10x256xf32>
    %176 = arith.divf %174, %175 : vector<10x256xf32>
    %177 = arith.mulf %171, %176 : vector<10x256xf32>
    %c0_73 = arith.constant 0 : index
    %c6_74 = arith.constant 6 : index
    %178 = vector.load %arg2[%c0_73, %c6_74] : memref<10x8xf32, #tpu.memory_space<vmem>>, vector<10x1xf32>
    %179 = vector.broadcast %178 : vector<10x1xf32> to vector<10x256xf32>
    %180 = arith.mulf %179, %177 : vector<10x256xf32>
    %cst_75 = arith.constant dense<0.000000e+00> : vector<256xf32>
    %181 = vector.multi_reduction <add>, %180, %cst_75 [0] : vector<10x256xf32> to vector<256xf32>
    %182 = vector.shape_cast %181 : vector<256xf32> to vector<1x256xf32>
    %c6_76 = arith.constant 6 : index
    %183 = memref.load %arg4[%c6_76] : memref<8xf32, #tpu.memory_space<smem>>
    %184 = vector.broadcast %183 : f32 to vector<1x256xf32>
    %185 = arith.addf %182, %184 : vector<1x256xf32>
    %186 = vector.broadcast %185 : vector<1x256xf32> to vector<4x256xf32>
    %187 = arith.addf %186, %164 : vector<4x256xf32>
    %188 = arith.addf %165, %185 : vector<1x256xf32>
    %c1_i32_77 = arith.constant 1 : i32
    %189 = tpu.dynamic_rotate %187 by %c1_i32_77 dim 1 : vector<4x256xf32>, i32 -> vector<4x256xf32>
    %190 = tpu.concatenate %189, %187 in 0 : vector<4x256xf32>, vector<4x256xf32> -> vector<8x256xf32>
    %c6_78 = arith.constant 6 : index
    %c0_79 = arith.constant 0 : index
    %c0_80 = arith.constant 0 : index
    %191 = vector.load %arg1[%c6_78, %c0_79, %c0_80] : memref<8x10x8xf32, #tpu.memory_space<vmem>>, vector<1x10x8xf32>
    %192 = vector.shape_cast %191 : vector<1x10x8xf32> to vector<10x8xf32>
    %cst_81 = arith.constant dense<0.000000e+00> : vector<10x256xf32>
    %193 = tpu.matmul %192, %190, %cst_81 {dimension_numbers = #tpu.dot_dimension_numbers<[1], [0], [0], [1], [0, 0, 1, 1], [], []>} : vector<10x8xf32>, vector<8x256xf32>, vector<10x256xf32> -> vector<10x256xf32>
    %194 = math.tanh %193 : vector<10x256xf32>
    %195 = arith.negf %193 : vector<10x256xf32>
    %196 = math.exp %195 : vector<10x256xf32>
    %cst_82 = arith.constant 1.000000e+00 : f32
    %197 = vector.broadcast %cst_82 : f32 to vector<10x256xf32>
    %198 = arith.addf %197, %196 : vector<10x256xf32>
    %199 = arith.divf %197, %198 : vector<10x256xf32>
    %200 = arith.mulf %194, %199 : vector<10x256xf32>
    %c0_83 = arith.constant 0 : index
    %c6_84 = arith.constant 6 : index
    %201 = vector.load %arg2[%c0_83, %c6_84] : memref<10x8xf32, #tpu.memory_space<vmem>>, vector<10x1xf32>
    %202 = vector.broadcast %201 : vector<10x1xf32> to vector<10x256xf32>
    %203 = arith.mulf %202, %200 : vector<10x256xf32>
    %cst_85 = arith.constant dense<0.000000e+00> : vector<256xf32>
    %204 = vector.multi_reduction <add>, %203, %cst_85 [0] : vector<10x256xf32> to vector<256xf32>
    %205 = vector.shape_cast %204 : vector<256xf32> to vector<1x256xf32>
    %c6_86 = arith.constant 6 : index
    %206 = memref.load %arg4[%c6_86] : memref<8xf32, #tpu.memory_space<smem>>
    %207 = vector.broadcast %206 : f32 to vector<1x256xf32>
    %208 = arith.addf %205, %207 : vector<1x256xf32>
    %209 = vector.broadcast %208 : vector<1x256xf32> to vector<4x256xf32>
    %210 = arith.addf %209, %187 : vector<4x256xf32>
    %211 = arith.addf %188, %208 : vector<1x256xf32>
    %c1_i32_87 = arith.constant 1 : i32
    %212 = tpu.dynamic_rotate %210 by %c1_i32_87 dim 1 : vector<4x256xf32>, i32 -> vector<4x256xf32>
    %213 = tpu.concatenate %212, %210 in 0 : vector<4x256xf32>, vector<4x256xf32> -> vector<8x256xf32>
    %c7 = arith.constant 7 : index
    %c0_88 = arith.constant 0 : index
    %c0_89 = arith.constant 0 : index
    %214 = vector.load %arg1[%c7, %c0_88, %c0_89] : memref<8x10x8xf32, #tpu.memory_space<vmem>>, vector<1x10x8xf32>
    %215 = vector.shape_cast %214 : vector<1x10x8xf32> to vector<10x8xf32>
    %cst_90 = arith.constant dense<0.000000e+00> : vector<10x256xf32>
    %216 = tpu.matmul %215, %213, %cst_90 {dimension_numbers = #tpu.dot_dimension_numbers<[1], [0], [0], [1], [0, 0, 1, 1], [], []>} : vector<10x8xf32>, vector<8x256xf32>, vector<10x256xf32> -> vector<10x256xf32>
    %217 = math.tanh %216 : vector<10x256xf32>
    %218 = arith.negf %216 : vector<10x256xf32>
    %219 = math.exp %218 : vector<10x256xf32>
    %cst_91 = arith.constant 1.000000e+00 : f32
    %220 = vector.broadcast %cst_91 : f32 to vector<10x256xf32>
    %221 = arith.addf %220, %219 : vector<10x256xf32>
    %222 = arith.divf %220, %221 : vector<10x256xf32>
    %223 = arith.mulf %217, %222 : vector<10x256xf32>
    %c0_92 = arith.constant 0 : index
    %c7_93 = arith.constant 7 : index
    %224 = vector.load %arg2[%c0_92, %c7_93] : memref<10x8xf32, #tpu.memory_space<vmem>>, vector<10x1xf32>
    %225 = vector.broadcast %224 : vector<10x1xf32> to vector<10x256xf32>
    %226 = arith.mulf %225, %223 : vector<10x256xf32>
    %cst_94 = arith.constant dense<0.000000e+00> : vector<256xf32>
    %227 = vector.multi_reduction <add>, %226, %cst_94 [0] : vector<10x256xf32> to vector<256xf32>
    %228 = vector.shape_cast %227 : vector<256xf32> to vector<1x256xf32>
    %c7_95 = arith.constant 7 : index
    %229 = memref.load %arg4[%c7_95] : memref<8xf32, #tpu.memory_space<smem>>
    %230 = vector.broadcast %229 : f32 to vector<1x256xf32>
    %231 = arith.addf %228, %230 : vector<1x256xf32>
    %232 = vector.broadcast %231 : vector<1x256xf32> to vector<4x256xf32>
    %233 = arith.addf %232, %210 : vector<4x256xf32>
    %234 = arith.addf %211, %231 : vector<1x256xf32>
    %c1_i32_96 = arith.constant 1 : i32
    %235 = tpu.dynamic_rotate %233 by %c1_i32_96 dim 1 : vector<4x256xf32>, i32 -> vector<4x256xf32>
    %236 = tpu.concatenate %235, %233 in 0 : vector<4x256xf32>, vector<4x256xf32> -> vector<8x256xf32>
    %c7_97 = arith.constant 7 : index
    %c0_98 = arith.constant 0 : index
    %c0_99 = arith.constant 0 : index
    %237 = vector.load %arg1[%c7_97, %c0_98, %c0_99] : memref<8x10x8xf32, #tpu.memory_space<vmem>>, vector<1x10x8xf32>
    %238 = vector.shape_cast %237 : vector<1x10x8xf32> to vector<10x8xf32>
    %cst_100 = arith.constant dense<0.000000e+00> : vector<10x256xf32>
    %239 = tpu.matmul %238, %236, %cst_100 {dimension_numbers = #tpu.dot_dimension_numbers<[1], [0], [0], [1], [0, 0, 1, 1], [], []>} : vector<10x8xf32>, vector<8x256xf32>, vector<10x256xf32> -> vector<10x256xf32>
    %240 = math.tanh %239 : vector<10x256xf32>
    %241 = arith.negf %239 : vector<10x256xf32>
    %242 = math.exp %241 : vector<10x256xf32>
    %cst_101 = arith.constant 1.000000e+00 : f32
    %243 = vector.broadcast %cst_101 : f32 to vector<10x256xf32>
    %244 = arith.addf %243, %242 : vector<10x256xf32>
    %245 = arith.divf %243, %244 : vector<10x256xf32>
    %246 = arith.mulf %240, %245 : vector<10x256xf32>
    %c0_102 = arith.constant 0 : index
    %c7_103 = arith.constant 7 : index
    %247 = vector.load %arg2[%c0_102, %c7_103] : memref<10x8xf32, #tpu.memory_space<vmem>>, vector<10x1xf32>
    %248 = vector.broadcast %247 : vector<10x1xf32> to vector<10x256xf32>
    %249 = arith.mulf %248, %246 : vector<10x256xf32>
    %cst_104 = arith.constant dense<0.000000e+00> : vector<256xf32>
    %250 = vector.multi_reduction <add>, %249, %cst_104 [0] : vector<10x256xf32> to vector<256xf32>
    %251 = vector.shape_cast %250 : vector<256xf32> to vector<1x256xf32>
    %c7_105 = arith.constant 7 : index
    %252 = memref.load %arg4[%c7_105] : memref<8xf32, #tpu.memory_space<smem>>
    %253 = vector.broadcast %252 : f32 to vector<1x256xf32>
    %254 = arith.addf %251, %253 : vector<1x256xf32>
    %255 = arith.addf %234, %254 : vector<1x256xf32>
    %256 = vector.broadcast %0 : f32 to vector<1x256xf32>
    %257 = arith.mulf %256, %255 : vector<1x256xf32>
    %258 = vector.broadcast %1 : f32 to vector<1x256xf32>
    %259 = arith.addf %257, %258 : vector<1x256xf32>
    %c0_106 = arith.constant 0 : index
    %c0_107 = arith.constant 0 : index
    %260 = vector.load %arg3[%c0_106, %c0_107] : memref<256x2xf32, #tpu.memory_space<vmem>>, vector<256x2xf32>
    %cst_108 = arith.constant dense<0.000000e+00> : vector<1x2xf32>
    %261 = tpu.matmul %259, %260, %cst_108 {dimension_numbers = #tpu.dot_dimension_numbers<[1], [0], [0], [1], [0, 0, 1, 1], [], []>} : vector<1x256xf32>, vector<256x2xf32>, vector<1x2xf32> -> vector<1x2xf32>
    %262 = vector.broadcast %2 : f32 to vector<1x2xf32>
    %263 = arith.addf %261, %262 : vector<1x2xf32>
    %c0_109 = arith.constant 0 : index
    %c0_110 = arith.constant 0 : index
    %264 = vector.load %arg6[%c0_109, %c0_110] : memref<1x2xf32, #tpu.memory_space<vmem>>, vector<1x2xf32>
    tpu.vector_store %arg6[%c0_109, %c0_110], %263 {strides = array<i32>} : memref<1x2xf32, #tpu.memory_space<vmem>>, vector<1x2xf32>,
    return
  }
}

</mosaic_0001>

<bundles_post_ra>
// kernel: tpu_custom_call.1
= control target key start
LH: loop header
LB: loop body
LE: loop exit
PB: predicated region body
PF: predicated region fallthrough
CT: control target
= control target key end

     0   :  { %11 = vsyncpa [#allocation4], 0  ;;  %s3138_s0 = inlined_call_operand.vmem [shape: f32[4,256], index: 0, kind: input, shape index: {}]   ;;  %s3139_s1 = inlined_call_operand.vmem [shape: f32[8,10,8], index: 1, kind: input, shape index: {}]   ;;  %s3140_s2 = inlined_call_operand.vmem [shape: f32[10,8], index: 2, kind: input, shape index: {}]   ;;  %s3141_s3 = inlined_call_operand.vmem [shape: f32[256,2], index: 3, kind: input, shape index: {}]   ;;  %s3142_s4 = inlined_call_operand.vmem [shape: f32[8], index: 4, kind: input, shape index: {}]   ;;  %s3143_s5 = inlined_call_operand.vmem [shape: f32[3], index: 5, kind: input, shape index: {}]   ;;  %s3144_s6 = inlined_call_operand.hbm [shape: f32[1,2], index: 6, kind: output, shape index: {}]  }
   0x1   :  { %12 = vsyncpa [#allocation6], 0 }
   0x2   :  { %13 = vsyncpa [#allocation3], 0  ;;  %s28_s23 = sshll.u32 %s3142_s4, 4  ;;  %s38_s26 = sshll.u32 %s3143_s5, 4  ;;  %s29_s23 = int_to_ptr.vmem [resolvable:$true] %s28_s23  ;;  %s39_s26 = int_to_ptr.vmem [resolvable:$true] %s38_s26 }
   0x3   :  { %s2433_s27 = scalar_lea.vmem %s29_s23, 16  ;;  %p2438_p1 = scmp.lt.s32.totalorder %s29_s23, %s29_s23 }
   0x4   :  { %p2434_p0 = scmp.ne.s32.totalorder %s29_s23, %s2433_s27  ;;  %p2439_p2 = scmp.lt.s32.totalorder %s2433_s27, %s2433_s27 }
   0x6   :  { %p2440_p3 = por %p2439_p2, %p2438_p1 }
   0x8   :  { %p2441_p4 = pnand %p2440_p3, %p2434_p0 }
   0xa   :  { %2444 = shalt.err (!%p2441_p4)
}
   0xb   :  { %s2485_s28 = smov [#allocation2]   ;;  %s2445_s29 = scalar_lea.vmem %s39_s26, 16 }
   0xc   :  { %31 = dma.vmem_to_smem %s29_s23, 16, %s2485_s28, [#allocation4]  }
   0xd   :  { %p2446_p5 = scmp.ne.s32.totalorder %s39_s26, %s2445_s29  ;;  %p2450_p6 = scmp.lt.s32.totalorder %s39_s26, %s39_s26 }
   0xe   :  { %p2451_p7 = scmp.lt.s32.totalorder %s2445_s29, %s2445_s29 }
  0x10   :  { %p2452_p8 = por %p2451_p7, %p2450_p6 }
  0x12   :  { %p2453_p9 = pnand %p2452_p8, %p2446_p5 }
  0x14   :  { %2456 = shalt.err (!%p2453_p9)
}
  0x15   :  { %s2486_s4 = smov [#allocation5]  }
  0x16   :  { %41 = dma.vmem_to_smem %s39_s26, 16, %s2486_s4, [#allocation6]  }
  0x17   :  { %2479 = dma.done.wait [#allocation4], 16  }
  0x18   :  { %2480 = vsyncadd [#allocation4], 4294967280 }
  0x19   :  { %2481 = dma.done.wait [#allocation6], 16  }
  0x1a   :  { %2482 = vsyncadd [#allocation6], 4294967280 }
  0x1b   :  { %48 = sfence }
  0x1c   :  { %v2542_v0 = vld [vmem:[%s3138_s0] sm:$0xff]  ;;  %s2487_s7 = smov 1   ;;  %v2488_v2 = vmov 0.0   ;;  %v189_v3 = vld [vmem:[%s3140_s2 + $0x8] sm:$0x3]  ;;  %v2489_v4 = vmov 0   ;;  %v60_v6 = vlaneseq }
  0x1d   :  { %56 = vrot.lane.b32.xlu0 %v2542_v0, %s2487_s7  ;;  %v2548_v1 = vcombine.high %v2542_v0, %v2542_v0  ;;  %143 = vmatprep.mubr.f32.mxu0 %v2488_v2  ;;  %v2558_v5 = vld [vmem:[%s3140_s2] sm:$0xff]  ;;  %v65_v9 = vcombine.low %v2542_v0, %v2542_v0  ;;  %vm67_vm1 = vcmask 1043456   ;;  %vm72_vm2 = vcmask 64512   ;;  %v71_v16 = vld [vmem:[%s3139_s1 + $0x8] sm:$0x3]  ;;  %s221_s15 = sld [smem:[#allocation2]] }
  0x1e   :  { %2150 = vset.pattern.permute.xlu1 %v2489_v4  ;;  %656 = vmatprep.mubr.f32.mxu1 %v2488_v2  ;;  %v2563_v7 = vand.u32 127, %v60_v6  ;;  %v70_v15 = vld [vmem:[%s3139_s1] sm:$0xff]  ;;  %vm204_vm3 = vcmask 1041408   ;;  %s1997_s22 = sld [smem:[#allocation2 + $0x1]]  ;;  %s2006_s27 = sld [smem:[#allocation2 + $0x2]]  ;;  %vm1963_vm4 = vcmask 8192  }
  0x1f   :  { %197 = vperm.xlu1 %2150, %v189_v3   ;;  %s2015_s30 = sld [smem:[#allocation2 + $0x3]]  ;;  %s2024_s11 = sld [smem:[#allocation2 + $0x4]] }
  0x20   :  { %vm62_vm0 = vcmp.lt.s32.totalorder %v2563_v7, 1  ;;  %s2033_s16 = sld [smem:[#allocation2 + $0x5]]  ;;  %s2048_s24 = sld [smem:[#allocation2 + $0x6]]  ;;  %v1877_v7 = vld [vmem:[%s3141_s3 + $0x88] sm:$0xff] }
  0x21   :  { %58 = vrot.lane.b32.xlu0 %v2548_v1, %s2487_s7  ;;  %s1981_s9 = sld [smem:[#allocation5 + $0x1]]  ;;  %s1982_s0 = sld [smem:[#allocation5 + $0x2]] }
  0x22   :  { %s2497_s10 = smov [#allocation7]  }
  0x23   :  { %192 = vperm.xlu1 %2150, %v2558_v5   ;;  %v222_v4 = vstv %s221_s15 }
  0x8f   :  { %v57_v8 = vpop.permute.xlu0 %56 }
  0x93   :  { %v59_v10 = vpop.permute.xlu0 %58 }
  0x94   :  { %v63_v11 = vsel %vm62_vm0, %v57_v8, %v59_v10  ;;  %v64_v12 = vsel %vm62_vm0, %v59_v10, %v57_v8 }
  0x95   :  { %v69_v13 = vsel %vm67_vm1, %v63_v11, %v2542_v0  ;;  %v68_v14 = vsel %vm67_vm1, %v64_v12, %v65_v9  ;;  %v2490_v11 = vmov 1  }
  0x96   :  { %79 = vmatprep.subr.mxu0 %v69_v13  ;;  %2152 = vset.pattern.permute.xlu1 %v2490_v11 }
  0x97   :  { %80 = vmatpush1.msra.mxu0 %v68_v14  ;;  %2151 = vset.pattern.permute.xlu0 %v2490_v11  ;;  %v2606_v14 = vld [vmem:[%s3140_s2 + $0x8] sm:$0x3] }
  0x98   :  { %1983 = vmatmul.mubr.msk.f32.vlgmr.msra.gmra.mrb[0].mxu0 %vm72_vm2, %v70_v15 }
  0x99   :  { %149 = vmatprep.mubr.f32.mxu0 %v2488_v2 }
  0x9c   :  { %1984 = vmatmul.mubr.msk.f32.gmra.mrb[2].mxu0 %vm72_vm2, %v71_v16 }
  0x9d   :  { %316 = vmatprep.mubr.f32.mxu0 %v2488_v2 }
  0x9e   :  { %v198_v35 = vpop.permute.xlu1 %197 }
  0xa2   :  { %v193_v44 = vpop.permute.xlu1 %192 }
 0x16b   :  { %v145_v17 = vpop.f32.mrb[0].mxu0 }
 0x16c   :  { %v1985_v18 = vmul.f32 -1.442695, %v145_v17  ;;  %v147_v19 = vpop.f32.mrb[1].mxu0 }
 0x16d   :  { %v1986_v20 = vmul.f32 -1.442695, %v147_v19 }
 0x16e   :  { %2167 = vpow2.f32 %v1985_v18 }
 0x16f   :  { %2169 = vpow2.f32 %v1986_v20  ;;  %v151_v21 = vpop.f32.mrb[2].mxu0 }
 0x170   :  { %v1987_v22 = vmul.f32 -1.442695, %v151_v21  ;;  %v153_v23 = vpop.f32.mrb[3].mxu0 }
 0x171   :  { %v1988_v24 = vmul.f32 -1.442695, %v153_v23 }
 0x172   :  { %2171 = vpow2.f32 %v1987_v22  ;;  %v1990_v22 = vld [vmem:[%s3139_s1 + $0x18] sm:$0x3] }
 0x173   :  { %2173 = vpow2.f32 %v1988_v24 }
 0x174   :  { %2175 = vtanh.f32 %v145_v17 }
 0x175   :  { %2177 = vtanh.f32 %v147_v19 }
 0x176   :  { %2179 = vtanh.f32 %v151_v21  ;;  %v1989_v21 = vld [vmem:[%s3139_s1 + $0x10] sm:$0xff] }
 0x178   :  { %v2168_v25 = vpop.eup %2167 }
 0x179   :  { %v2170_v26 = vpop.eup %2169  ;;  %v172_v27 = vadd.f32 1.0, %v2168_v25 }
 0x17a   :  { %v173_v28 = vadd.f32 1.0, %v2170_v26 }
 0x17b   :  { %2181 = vrcp.f32 %v172_v27 }
 0x17c   :  { %v2172_v29 = vpop.eup %2171  ;;  %2183 = vrcp.f32 %v173_v28 }
 0x17d   :  { %v2174_v30 = vpop.eup %2173  ;;  %v174_v31 = vadd.f32 1.0, %v2172_v29  ;;  %2185 = vtanh.f32 %v153_v23 }
 0x17e   :  { %v175_v32 = vadd.f32 1.0, %v2174_v30  ;;  %v2176_v33 = vpop.eup %2175 }
 0x17f   :  { %2187 = vrcp.f32 %v174_v31  ;;  %v2178_v34 = vpop.eup %2177 }
 0x180   :  { %2189 = vrcp.f32 %v175_v32  ;;  %v2180_v36 = vpop.eup %2179 }
 0x185   :  { %v2182_v37 = vpop.eup %2181 }
 0x186   :  { %v2184_v38 = vpop.eup %2183  ;;  %v184_v41 = vmul.f32 %v2182_v37, %v2176_v33 }
 0x187   :  { %v2186_v39 = vpop.eup %2185  ;;  %v185_v45 = vmul.f32 %v2184_v38, %v2178_v34 }
 0x188   :  { %v200_v49 = vmul.f32 %v193_v44, %v184_v41 }
 0x189   :  { %v2188_v40 = vpop.eup %2187  ;;  %v201_v51 = vmul.f32 %v193_v44, %v185_v45 }
 0x18a   :  { %v2190_v42 = vpop.eup %2189  ;;  %v186_v43 = vmul.f32 %v2188_v40, %v2180_v36 }
 0x18b   :  { %v187_v46 = vmul.f32 %v2190_v42, %v2186_v39 }
 0x18c   :  { %v202_v47 = vmul.f32 %v198_v35, %v186_v43 }
 0x18d   :  { %v203_v48 = vmul.f32 %v198_v35, %v187_v46 }
 0x18e   :  { %v205_v50 = vsel %vm204_vm3, %v202_v47, 0.0 }
 0x18f   :  { %v213_v52 = vsel %vm204_vm3, %v203_v48, 0.0  ;;  %v206_v53 = vadd.f32 %v205_v50, %v200_v49 }
 0x190   :  { %v214_v54 = vadd.f32 %v213_v52, %v201_v51 }
 0x191   :  { %v207_v55 = vrot.slane %v206_v53, 4 }
 0x192   :  { %v215_v56 = vrot.slane %v214_v54, 4 }
 0x193   :  { %v208_v57 = vadd.f32 %v207_v55, %v206_v53 }
 0x194   :  { %v216_v58 = vadd.f32 %v215_v56, %v214_v54 }
 0x195   :  { %v209_v59 = vrot.slane %v208_v57, 2 }
 0x196   :  { %v217_v60 = vrot.slane %v216_v58, 2 }
 0x197   :  { %v210_v61 = vadd.f32 %v209_v59, %v208_v57 }
 0x198   :  { %v218_v62 = vadd.f32 %v217_v60, %v216_v58 }
 0x199   :  { %v211_v63 = vrot.slane %v210_v61, 1 }
 0x19a   :  { %v219_v3 = vrot.slane %v218_v62, 1 }
 0x19b   :  { %v212_v6 = vadd.f32 %v211_v63, %v210_v61 }
 0x19c   :  { %v220_v8 = vadd.f32 %v219_v3, %v218_v62 }
 0x19d   :  { %v2587_v9 = vadd.f32 %v222_v4, %v212_v6 }
 0x19e   :  { %v2589_v10 = vadd.f32 %v222_v4, %v220_v8 }
 0x19f   :  { %v2593_v12 = vadd.f32 %v2587_v9, %v2542_v0 }
 0x1a0   :  { %v2597_v13 = vadd.f32 %v2589_v10, %v2548_v1 }
 0x1a1   :  { %229 = vrot.lane.b32.xlu0 %v2593_v12, %s2487_s7  ;;  %v237_v16 = vrot.slane %v2593_v12, 4 }
 0x1a2   :  { %231 = vrot.lane.b32.xlu1 %v2597_v13, %s2487_s7  ;;  %v238_v1 = vrot.slane %v2597_v13, 4 }
 0x1a5   :  { %370 = vperm.xlu0 %2151, %v2606_v14  }
 0x1a6   :  { %365 = vperm.xlu1 %2152, %v2558_v5  }
 0x213   :  { %v230_v0 = vpop.permute.xlu0 %229 }
 0x214   :  { %v232_v15 = vpop.permute.xlu1 %231 }
 0x215   :  { %v233_v17 = vsel %vm62_vm0, %v230_v0, %v232_v15  ;;  %v234_v18 = vsel %vm62_vm0, %v232_v15, %v230_v0  ;;  %v394_v15 = vstv %s1997_s22 }
 0x216   :  { %v242_v19 = vsel %vm67_vm1, %v233_v17, %v238_v1  ;;  %v241_v20 = vsel %vm67_vm1, %v234_v18, %v237_v16 }
 0x217   :  { %252 = vmatprep.subr.mxu0 %v242_v19 }
 0x218   :  { %253 = vmatpush1.msra.mxu0 %v241_v20  ;;  %v2491_v20 = vmov 2  }
 0x219   :  { %1991 = vmatmul.mubr.msk.f32.vlgmr.msra.gmra.mrb[4].mxu0 %vm72_vm2, %v1989_v21  ;;  %2154 = vset.pattern.permute.xlu0 %v2491_v20 }
 0x21a   :  { %322 = vmatprep.mubr.f32.mxu0 %v2488_v2  ;;  %2153 = vset.pattern.permute.xlu1 %v2491_v20 }
 0x21d   :  { %1992 = vmatmul.mubr.msk.f32.gmra.mrb[6].mxu0 %vm72_vm2, %v1990_v22 }
 0x21e   :  { %488 = vmatprep.mubr.f32.mxu0 %v2488_v2 }
 0x224   :  { %v371_v47 = vpop.permute.xlu0 %370 }
 0x225   :  { %v366_v49 = vpop.permute.xlu1 %365 }
 0x2ec   :  { %v318_v23 = vpop.f32.mrb[4].mxu0 }
 0x2ed   :  { %v1993_v24 = vmul.f32 -1.442695, %v318_v23  ;;  %v320_v25 = vpop.f32.mrb[5].mxu0 }
 0x2ee   :  { %v1994_v26 = vmul.f32 -1.442695, %v320_v25 }
 0x2ef   :  { %2191 = vpow2.f32 %v1993_v24 }
 0x2f0   :  { %2193 = vpow2.f32 %v1994_v26  ;;  %v324_v27 = vpop.f32.mrb[6].mxu0 }
 0x2f1   :  { %v1995_v28 = vmul.f32 -1.442695, %v324_v27  ;;  %v326_v29 = vpop.f32.mrb[7].mxu0 }
 0x2f2   :  { %v1996_v30 = vmul.f32 -1.442695, %v326_v29 }
 0x2f3   :  { %2195 = vpow2.f32 %v1995_v28 }
 0x2f4   :  { %2197 = vpow2.f32 %v1996_v30  ;;  %v1999_v30 = vld [vmem:[%s3139_s1 + $0x28] sm:$0x3] }
 0x2f5   :  { %2199 = vtanh.f32 %v318_v23 }
 0x2f6   :  { %2201 = vtanh.f32 %v320_v25 }
 0x2f7   :  { %2203 = vtanh.f32 %v324_v27 }
 0x2f9   :  { %v2192_v31 = vpop.eup %2191 }
 0x2fa   :  { %v2194_v32 = vpop.eup %2193  ;;  %v345_v33 = vadd.f32 1.0, %v2192_v31 }
 0x2fb   :  { %v346_v34 = vadd.f32 1.0, %v2194_v32 }
 0x2fc   :  { %2205 = vrcp.f32 %v345_v33 }
 0x2fd   :  { %v2196_v35 = vpop.eup %2195  ;;  %2207 = vrcp.f32 %v346_v34 }
 0x2fe   :  { %v2198_v36 = vpop.eup %2197  ;;  %v347_v37 = vadd.f32 1.0, %v2196_v35  ;;  %2209 = vtanh.f32 %v326_v29  ;;  %v1998_v29 = vld [vmem:[%s3139_s1 + $0x20] sm:$0xff] }
 0x2ff   :  { %v348_v38 = vadd.f32 1.0, %v2198_v36  ;;  %v2200_v39 = vpop.eup %2199 }
 0x300   :  { %2211 = vrcp.f32 %v347_v37  ;;  %v2202_v40 = vpop.eup %2201 }
 0x301   :  { %2213 = vrcp.f32 %v348_v38  ;;  %v2204_v41 = vpop.eup %2203 }
 0x306   :  { %v2206_v42 = vpop.eup %2205 }
 0x307   :  { %v2208_v43 = vpop.eup %2207  ;;  %v357_v46 = vmul.f32 %v2206_v42, %v2200_v39 }
 0x308   :  { %v2210_v44 = vpop.eup %2209  ;;  %v358_v50 = vmul.f32 %v2208_v43, %v2202_v40 }
 0x309   :  { %v373_v54 = vmul.f32 %v366_v49, %v357_v46 }
 0x30a   :  { %v2212_v45 = vpop.eup %2211  ;;  %v374_v56 = vmul.f32 %v366_v49, %v358_v50 }
 0x30b   :  { %v2214_v48 = vpop.eup %2213  ;;  %v359_v51 = vmul.f32 %v2212_v45, %v2204_v41 }
 0x30c   :  { %v360_v52 = vmul.f32 %v2214_v48, %v2210_v44 }
 0x30d   :  { %v375_v53 = vmul.f32 %v371_v47, %v359_v51 }
 0x30e   :  { %v376_v55 = vmul.f32 %v371_v47, %v360_v52 }
 0x30f   :  { %v377_v57 = vsel %vm204_vm3, %v375_v53, 0.0 }
 0x310   :  { %v378_v58 = vadd.f32 %v377_v57, %v373_v54  ;;  %v385_v59 = vsel %vm204_vm3, %v376_v55, 0.0 }
 0x311   :  { %v386_v60 = vadd.f32 %v385_v59, %v374_v56 }
 0x312   :  { %v379_v61 = vrot.slane %v378_v58, 4 }
 0x313   :  { %v387_v62 = vrot.slane %v386_v60, 4 }
 0x314   :  { %v380_v63 = vadd.f32 %v379_v61, %v378_v58 }
 0x315   :  { %v388_v3 = vadd.f32 %v387_v62, %v386_v60 }
 0x316   :  { %v381_v4 = vrot.slane %v380_v63, 2 }
 0x317   :  { %v389_v6 = vrot.slane %v388_v3, 2 }
 0x318   :  { %v382_v8 = vadd.f32 %v381_v4, %v380_v63 }
 0x319   :  { %v390_v11 = vadd.f32 %v389_v6, %v388_v3 }
 0x31a   :  { %v383_v0 = vrot.slane %v382_v8, 1 }
 0x31b   :  { %v391_v1 = vrot.slane %v390_v11, 1 }
 0x31c   :  { %v384_v16 = vadd.f32 %v383_v0, %v382_v8 }
 0x31d   :  { %v392_v17 = vadd.f32 %v391_v1, %v390_v11 }
 0x31e   :  { %v2630_v18 = vadd.f32 %v394_v15, %v384_v16 }
 0x31f   :  { %v2632_v19 = vadd.f32 %v394_v15, %v392_v17 }
 0x320   :  { %v2636_v21 = vadd.f32 %v2630_v18, %v2593_v12 }
 0x321   :  { %v2640_v22 = vadd.f32 %v2632_v19, %v2597_v13 }
 0x322   :  { %401 = vrot.lane.b32.xlu1 %v2636_v21, %s2487_s7  ;;  %v409_v12 = vrot.slane %v2636_v21, 4 }
 0x323   :  { %403 = vrot.lane.b32.xlu0 %v2640_v22, %s2487_s7  ;;  %v410_v25 = vrot.slane %v2640_v22, 4 }
 0x326   :  { %538 = vperm.xlu1 %2153, %v2606_v14  }
 0x327   :  { %534 = vperm.xlu0 %2154, %v2558_v5  }
 0x394   :  { %v402_v23 = vpop.permute.xlu1 %401 }
 0x395   :  { %v404_v24 = vpop.permute.xlu0 %403 }
 0x396   :  { %v405_v13 = vsel %vm62_vm0, %v402_v23, %v404_v24  ;;  %v406_v26 = vsel %vm62_vm0, %v404_v24, %v402_v23 }
 0x397   :  { %v414_v27 = vsel %vm67_vm1, %v405_v13, %v410_v25  ;;  %v413_v28 = vsel %vm67_vm1, %v406_v26, %v409_v12  ;;  %v562_v12 = vstv %s2006_s27 }
 0x398   :  { %424 = vmatprep.subr.mxu0 %v414_v27 }
 0x399   :  { %425 = vmatpush1.msra.mxu0 %v413_v28  ;;  %v399_v28 = vadd.f32 %v2630_v18, %v2587_v9 }
 0x39a   :  { %2000 = vmatmul.mubr.msk.f32.vlgmr.msra.gmra.mrb[8].mxu0 %vm72_vm2, %v1998_v29 }
 0x39b   :  { %494 = vmatprep.mubr.f32.mxu0 %v2488_v2 }
 0x39e   :  { %2001 = vmatmul.mubr.msk.f32.gmra.mrb[10].mxu0 %vm72_vm2, %v1999_v30  ;;  %v400_v30 = vadd.f32 %v2632_v19, %v2589_v10 }
 0x39f   :  { %824 = vmatprep.mubr.f32.mxu0 %v2488_v2 }
 0x3a5   :  { %v539_v55 = vpop.permute.xlu1 %538 }
 0x3a6   :  { %v535_v57 = vpop.permute.xlu0 %534 }
 0x46d   :  { %v490_v31 = vpop.f32.mrb[8].mxu0 }
 0x46e   :  { %v2002_v32 = vmul.f32 -1.442695, %v490_v31  ;;  %v492_v33 = vpop.f32.mrb[9].mxu0 }
 0x46f   :  { %v2003_v34 = vmul.f32 -1.442695, %v492_v33 }
 0x470   :  { %2215 = vpow2.f32 %v2002_v32 }
 0x471   :  { %2217 = vpow2.f32 %v2003_v34  ;;  %v496_v35 = vpop.f32.mrb[10].mxu0 }
 0x472   :  { %v2004_v36 = vmul.f32 -1.442695, %v496_v35  ;;  %v498_v37 = vpop.f32.mrb[11].mxu0 }
 0x473   :  { %v2005_v38 = vmul.f32 -1.442695, %v498_v37 }
 0x474   :  { %2219 = vpow2.f32 %v2004_v36 }
 0x475   :  { %2221 = vpow2.f32 %v2005_v38 }
 0x476   :  { %2223 = vtanh.f32 %v490_v31 }
 0x477   :  { %2225 = vtanh.f32 %v492_v33 }
 0x478   :  { %2227 = vtanh.f32 %v496_v35  ;;  %v2492_v35 = vmov 3  }
 0x479   :  { %2155 = vset.pattern.permute.xlu0 %v2492_v35  ;;  %2156 = vset.pattern.permute.xlu1 %v2492_v35 }
 0x47a   :  { %v2216_v39 = vpop.eup %2215  ;;  %706 = vperm.xlu0 %2155, %v2606_v14  }
 0x47b   :  { %v2218_v40 = vpop.eup %2217  ;;  %v517_v41 = vadd.f32 1.0, %v2216_v39  ;;  %v2007_v39 = vld [vmem:[%s3139_s1 + $0x30] sm:$0xff] }
 0x47c   :  { %v518_v42 = vadd.f32 1.0, %v2218_v40  ;;  %v2008_v40 = vld [vmem:[%s3139_s1 + $0x38] sm:$0x3] }
 0x47d   :  { %2229 = vrcp.f32 %v517_v41 }
 0x47e   :  { %v2220_v43 = vpop.eup %2219  ;;  %2231 = vrcp.f32 %v518_v42 }
 0x47f   :  { %v2222_v44 = vpop.eup %2221  ;;  %v519_v45 = vadd.f32 1.0, %v2220_v43  ;;  %2233 = vtanh.f32 %v498_v37 }
 0x480   :  { %v520_v46 = vadd.f32 1.0, %v2222_v44  ;;  %v2224_v47 = vpop.eup %2223 }
 0x481   :  { %2235 = vrcp.f32 %v519_v45  ;;  %v2226_v48 = vpop.eup %2225 }
 0x482   :  { %2237 = vrcp.f32 %v520_v46  ;;  %v2228_v49 = vpop.eup %2227 }
 0x487   :  { %v2230_v50 = vpop.eup %2229 }
 0x488   :  { %v2232_v51 = vpop.eup %2231  ;;  %v529_v54 = vmul.f32 %v2230_v50, %v2224_v47 }
 0x489   :  { %v2234_v52 = vpop.eup %2233  ;;  %v530_v58 = vmul.f32 %v2232_v51, %v2226_v48 }
 0x48a   :  { %v541_v62 = vmul.f32 %v535_v57, %v529_v54 }
 0x48b   :  { %v2236_v53 = vpop.eup %2235  ;;  %v542_v3 = vmul.f32 %v535_v57, %v530_v58 }
 0x48c   :  { %v2238_v56 = vpop.eup %2237  ;;  %v531_v59 = vmul.f32 %v2236_v53, %v2228_v49 }
 0x48d   :  { %v532_v60 = vmul.f32 %v2238_v56, %v2234_v52 }
 0x48e   :  { %v543_v61 = vmul.f32 %v539_v55, %v531_v59 }
 0x48f   :  { %v544_v63 = vmul.f32 %v539_v55, %v532_v60 }
 0x490   :  { %v545_v4 = vsel %vm204_vm3, %v543_v61, 0.0 }
 0x491   :  { %v546_v6 = vadd.f32 %v545_v4, %v541_v62  ;;  %v553_v8 = vsel %vm204_vm3, %v544_v63, 0.0 }
 0x492   :  { %v554_v11 = vadd.f32 %v553_v8, %v542_v3 }
 0x493   :  { %v547_v0 = vrot.slane %v546_v6, 4 }
 0x494   :  { %v555_v15 = vrot.slane %v554_v11, 4 }
 0x495   :  { %v548_v1 = vadd.f32 %v547_v0, %v546_v6 }
 0x496   :  { %v556_v16 = vadd.f32 %v555_v15, %v554_v11 }
 0x497   :  { %v549_v17 = vrot.slane %v548_v1, 2 }
 0x498   :  { %v557_v20 = vrot.slane %v556_v16, 2 }
 0x499   :  { %v550_v23 = vadd.f32 %v549_v17, %v548_v1 }
 0x49a   :  { %v558_v24 = vadd.f32 %v557_v20, %v556_v16 }
 0x49b   :  { %v551_v25 = vrot.slane %v550_v23, 1 }
 0x49c   :  { %v559_v13 = vrot.slane %v558_v24, 1 }
 0x49d   :  { %v552_v26 = vadd.f32 %v551_v25, %v550_v23 }
 0x49e   :  { %v560_v27 = vadd.f32 %v559_v13, %v558_v24 }
 0x49f   :  { %v563_v29 = vadd.f32 %v562_v12, %v552_v26 }
 0x4a0   :  { %v564_v31 = vadd.f32 %v562_v12, %v560_v27 }
 0x4a1   :  { %v2673_v32 = vadd.f32 %v563_v29, %v2636_v21  ;;  %v2675_v33 = vadd.f32 %v563_v29, %v399_v28 }
 0x4a2   :  { %v2677_v34 = vadd.f32 %v564_v31, %v400_v30  ;;  %v2683_v9 = vadd.f32 %v564_v31, %v2640_v22 }
 0x4a3   :  { %569 = vrot.lane.b32.xlu1 %v2673_v32, %s2487_s7  ;;  %v577_v21 = vrot.slane %v2673_v32, 4 }
 0x4a4   :  { %v578_v19 = vrot.slane %v2683_v9, 4 }
 0x4a7   :  { %571 = vrot.lane.b32.xlu1 %v2683_v9, %s2487_s7 }
 0x4ab   :  { %702 = vperm.xlu1 %2156, %v2558_v5  }
 0x4f9   :  { %v707_v4 = vpop.permute.xlu0 %706 }
 0x515   :  { %v570_v10 = vpop.permute.xlu1 %569 }
 0x519   :  { %v572_v18 = vpop.permute.xlu1 %571 }
 0x51a   :  { %v573_v36 = vsel %vm62_vm0, %v570_v10, %v572_v18  ;;  %v574_v37 = vsel %vm62_vm0, %v572_v18, %v570_v10  ;;  %v730_v18 = vstv %s2015_s30 }
 0x51b   :  { %v582_v22 = vsel %vm67_vm1, %v573_v36, %v578_v19  ;;  %v581_v38 = vsel %vm67_vm1, %v574_v37, %v577_v21 }
 0x51c   :  { %592 = vmatprep.subr.mxu1 %v582_v22 }
 0x51d   :  { %593 = vmatpush1.msra.mxu1 %v581_v38  ;;  %v2493_v38 = vmov 4  }
 0x51e   :  { %2009 = vmatmul.mubr.msk.f32.vlgmr.msra.gmra.mrb[0].mxu1 %vm72_vm2, %v2007_v39  ;;  %2158 = vset.pattern.permute.xlu0 %v2493_v38 }
 0x51f   :  { %662 = vmatprep.mubr.f32.mxu1 %v2488_v2  ;;  %2157 = vset.pattern.permute.xlu1 %v2493_v38 }
 0x522   :  { %2010 = vmatmul.mubr.msk.f32.gmra.mrb[2].mxu1 %vm72_vm2, %v2008_v40 }
 0x523   :  { %992 = vmatprep.mubr.f32.mxu1 %v2488_v2 }
 0x52a   :  { %v703_v8 = vpop.permute.xlu1 %702 }
 0x5f1   :  { %v658_v41 = vpop.f32.mrb[0].mxu1 }
 0x5f2   :  { %v2011_v42 = vmul.f32 -1.442695, %v658_v41  ;;  %v660_v43 = vpop.f32.mrb[1].mxu1 }
 0x5f3   :  { %v2012_v44 = vmul.f32 -1.442695, %v660_v43 }
 0x5f4   :  { %2239 = vpow2.f32 %v2011_v42 }
 0x5f5   :  { %2241 = vpow2.f32 %v2012_v44  ;;  %v664_v45 = vpop.f32.mrb[2].mxu1 }
 0x5f6   :  { %v2013_v46 = vmul.f32 -1.442695, %v664_v45  ;;  %v666_v47 = vpop.f32.mrb[3].mxu1 }
 0x5f7   :  { %v2014_v48 = vmul.f32 -1.442695, %v666_v47 }
 0x5f8   :  { %2243 = vpow2.f32 %v2013_v46 }
 0x5f9   :  { %2245 = vpow2.f32 %v2014_v48  ;;  %v2017_v48 = vld [vmem:[%s3139_s1 + $0x48] sm:$0x3] }
 0x5fa   :  { %2247 = vtanh.f32 %v658_v41 }
 0x5fb   :  { %2249 = vtanh.f32 %v660_v43 }
 0x5fc   :  { %2251 = vtanh.f32 %v664_v45 }
 0x5fe   :  { %v2240_v49 = vpop.eup %2239 }
 0x5ff   :  { %v2242_v50 = vpop.eup %2241  ;;  %v685_v51 = vadd.f32 1.0, %v2240_v49 }
 0x600   :  { %v686_v52 = vadd.f32 1.0, %v2242_v50 }
 0x601   :  { %2253 = vrcp.f32 %v685_v51 }
 0x602   :  { %v2244_v53 = vpop.eup %2243  ;;  %2255 = vrcp.f32 %v686_v52 }
 0x603   :  { %v2246_v54 = vpop.eup %2245  ;;  %v687_v55 = vadd.f32 1.0, %v2244_v53  ;;  %2257 = vtanh.f32 %v666_v47  ;;  %v2016_v47 = vld [vmem:[%s3139_s1 + $0x40] sm:$0xff] }
 0x604   :  { %v688_v56 = vadd.f32 1.0, %v2246_v54  ;;  %v2248_v57 = vpop.eup %2247 }
 0x605   :  { %2259 = vrcp.f32 %v687_v55  ;;  %v2250_v58 = vpop.eup %2249 }
 0x606   :  { %2261 = vrcp.f32 %v688_v56  ;;  %v2252_v59 = vpop.eup %2251 }
 0x60b   :  { %v2254_v60 = vpop.eup %2253 }
 0x60c   :  { %v2256_v61 = vpop.eup %2255  ;;  %v697_v3 = vmul.f32 %v2254_v60, %v2248_v57 }
 0x60d   :  { %v2258_v62 = vpop.eup %2257  ;;  %v698_v11 = vmul.f32 %v2256_v61, %v2250_v58 }
 0x60e   :  { %v709_v16 = vmul.f32 %v703_v8, %v697_v3 }
 0x60f   :  { %v2260_v63 = vpop.eup %2259  ;;  %v710_v20 = vmul.f32 %v703_v8, %v698_v11 }
 0x610   :  { %v2262_v6 = vpop.eup %2261  ;;  %v699_v0 = vmul.f32 %v2260_v63, %v2252_v59 }
 0x611   :  { %v700_v15 = vmul.f32 %v2262_v6, %v2258_v62 }
 0x612   :  { %v711_v1 = vmul.f32 %v707_v4, %v699_v0 }
 0x613   :  { %v712_v17 = vmul.f32 %v707_v4, %v700_v15 }
 0x614   :  { %v713_v23 = vsel %vm204_vm3, %v711_v1, 0.0 }
 0x615   :  { %v714_v24 = vadd.f32 %v713_v23, %v709_v16  ;;  %v721_v25 = vsel %vm204_vm3, %v712_v17, 0.0 }
 0x616   :  { %v722_v12 = vadd.f32 %v721_v25, %v710_v20 }
 0x617   :  { %v715_v13 = vrot.slane %v714_v24, 4 }
 0x618   :  { %v723_v26 = vrot.slane %v722_v12, 4 }
 0x619   :  { %v716_v27 = vadd.f32 %v715_v13, %v714_v24 }
 0x61a   :  { %v724_v28 = vadd.f32 %v723_v26, %v722_v12 }
 0x61b   :  { %v717_v29 = vrot.slane %v716_v27, 2 }
 0x61c   :  { %v725_v30 = vrot.slane %v724_v28, 2 }
 0x61d   :  { %v718_v31 = vadd.f32 %v717_v29, %v716_v27 }
 0x61e   :  { %v726_v35 = vadd.f32 %v725_v30, %v724_v28 }
 0x61f   :  { %v719_v10 = vrot.slane %v718_v31, 1 }
 0x620   :  { %v727_v19 = vrot.slane %v726_v35, 1 }
 0x621   :  { %v720_v21 = vadd.f32 %v719_v10, %v718_v31 }
 0x622   :  { %v728_v36 = vadd.f32 %v727_v19, %v726_v35 }
 0x623   :  { %v731_v37 = vadd.f32 %v730_v18, %v720_v21 }
 0x624   :  { %v732_v22 = vadd.f32 %v730_v18, %v728_v36 }
 0x625   :  { %v2709_v39 = vadd.f32 %v731_v37, %v2673_v32  ;;  %v2712_v40 = vadd.f32 %v731_v37, %v2675_v33 }
 0x626   :  { %v2715_v41 = vadd.f32 %v732_v22, %v2683_v9  ;;  %v2718_v42 = vadd.f32 %v732_v22, %v2677_v34 }
 0x627   :  { %737 = vrot.lane.b32.xlu1 %v2709_v39, %s2487_s7  ;;  %v745_v9 = vrot.slane %v2709_v39, 4 }
 0x628   :  { %739 = vrot.lane.b32.xlu0 %v2715_v41, %s2487_s7  ;;  %v746_v33 = vrot.slane %v2715_v41, 4 }
 0x62b   :  { %874 = vperm.xlu1 %2157, %v2606_v14  }
 0x62c   :  { %870 = vperm.xlu0 %2158, %v2558_v5  }
 0x699   :  { %v738_v32 = vpop.permute.xlu1 %737 }
 0x69a   :  { %v740_v43 = vpop.permute.xlu0 %739 }
 0x69b   :  { %v741_v34 = vsel %vm62_vm0, %v738_v32, %v740_v43  ;;  %v742_v44 = vsel %vm62_vm0, %v740_v43, %v738_v32  ;;  %v898_v43 = vstv %s2024_s11  ;;  %s1971_s11 = sshll.u32 %s2497_s10, 4  ;;  %s1972_s11 = int_to_ptr.vmem [resolvable:$true] %s1971_s11 }
 0x69c   :  { %v750_v45 = vsel %vm67_vm1, %v741_v34, %v746_v33  ;;  %v749_v46 = vsel %vm67_vm1, %v742_v44, %v745_v9  ;;  %s2457_s12 = scalar_lea.vmem %s1972_s11, 16  ;;  %s2461_s13 = scalar_lea.vmem %s1972_s11, 32 }
 0x69d   :  { %760 = vmatprep.subr.mxu0 %v750_v45  ;;  %p2458_p10 = scmp.ne.s32.totalorder %s1972_s11, %s2457_s12  ;;  %p2462_p11 = scmp.lt.s32.totalorder %s1972_s11, %s1972_s11 }
 0x69e   :  { %761 = vmatpush1.msra.mxu0 %v749_v46  ;;  %p2463_p12 = scmp.lt.s32.totalorder %s2461_s13, %s2457_s12 }
 0x69f   :  { %2018 = vmatmul.mubr.msk.f32.vlgmr.msra.gmra.mrb[12].mxu0 %vm72_vm2, %v2016_v47 }
 0x6a0   :  { %830 = vmatprep.mubr.f32.mxu0 %v2488_v2  ;;  %p2464_p13 = por %p2463_p12, %p2462_p11 }
 0x6a2   :  { %p2465_p0 = pnand %p2464_p13, %p2458_p10 }
 0x6a3   :  { %2019 = vmatmul.mubr.msk.f32.gmra.mrb[14].mxu0 %vm72_vm2, %v2017_v48 }
 0x6a4   :  { %1151 = vmatprep.mubr.f32.mxu0 %v2488_v2 }
 0x6aa   :  { %v875_v17 = vpop.permute.xlu1 %874 }
 0x6ab   :  { %v871_v23 = vpop.permute.xlu0 %870 }
 0x772   :  { %v826_v49 = vpop.f32.mrb[12].mxu0 }
 0x773   :  { %v2020_v50 = vmul.f32 -1.442695, %v826_v49  ;;  %v828_v51 = vpop.f32.mrb[13].mxu0 }
 0x774   :  { %v2021_v52 = vmul.f32 -1.442695, %v828_v51 }
 0x775   :  { %2263 = vpow2.f32 %v2020_v50 }
 0x776   :  { %2265 = vpow2.f32 %v2021_v52  ;;  %v832_v53 = vpop.f32.mrb[14].mxu0 }
 0x777   :  { %v2022_v54 = vmul.f32 -1.442695, %v832_v53  ;;  %v834_v55 = vpop.f32.mrb[15].mxu0 }
 0x778   :  { %v2023_v56 = vmul.f32 -1.442695, %v834_v55 }
 0x779   :  { %2267 = vpow2.f32 %v2022_v54  ;;  %v2783_v54 = vld [vmem:[%s3139_s1 + $0x58] sm:$0x3] }
 0x77a   :  { %2269 = vpow2.f32 %v2023_v56 }
 0x77b   :  { %2271 = vtanh.f32 %v826_v49  ;;  %v2494_v49 = vmov 5  }
 0x77c   :  { %2273 = vtanh.f32 %v828_v51  ;;  %2159 = vset.pattern.permute.xlu0 %v2494_v49  ;;  %2160 = vset.pattern.permute.xlu1 %v2494_v49  ;;  %v2798_v49 = vstv %s2033_s16 }
 0x77d   :  { %2275 = vtanh.f32 %v832_v53  ;;  %1042 = vperm.xlu0 %2159, %v2606_v14  }
 0x77f   :  { %v2264_v57 = vpop.eup %2263 }
 0x780   :  { %v2266_v58 = vpop.eup %2265  ;;  %v853_v59 = vadd.f32 1.0, %v2264_v57 }
 0x781   :  { %v854_v60 = vadd.f32 1.0, %v2266_v58 }
 0x782   :  { %2277 = vrcp.f32 %v853_v59 }
 0x783   :  { %v2268_v61 = vpop.eup %2267  ;;  %2279 = vrcp.f32 %v854_v60 }
 0x784   :  { %v2270_v62 = vpop.eup %2269  ;;  %v855_v63 = vadd.f32 1.0, %v2268_v61  ;;  %2281 = vtanh.f32 %v834_v55 }
 0x785   :  { %v856_v3 = vadd.f32 1.0, %v2270_v62  ;;  %v2272_v4 = vpop.eup %2271 }
 0x786   :  { %2283 = vrcp.f32 %v855_v63  ;;  %v2274_v6 = vpop.eup %2273 }
 0x787   :  { %2285 = vrcp.f32 %v856_v3  ;;  %v2276_v8 = vpop.eup %2275 }
 0x78c   :  { %v2278_v11 = vpop.eup %2277 }
 0x78d   :  { %v2280_v0 = vpop.eup %2279  ;;  %v865_v16 = vmul.f32 %v2278_v11, %v2272_v4 }
 0x78e   :  { %v2282_v15 = vpop.eup %2281  ;;  %v866_v24 = vmul.f32 %v2280_v0, %v2274_v6 }
 0x78f   :  { %v877_v26 = vmul.f32 %v871_v23, %v865_v16 }
 0x790   :  { %v2284_v1 = vpop.eup %2283  ;;  %v878_v28 = vmul.f32 %v871_v23, %v866_v24 }
 0x791   :  { %v2286_v20 = vpop.eup %2285  ;;  %v867_v25 = vmul.f32 %v2284_v1, %v2276_v8 }
 0x792   :  { %v868_v12 = vmul.f32 %v2286_v20, %v2282_v15 }
 0x793   :  { %v879_v13 = vmul.f32 %v875_v17, %v867_v25 }
 0x794   :  { %v880_v27 = vmul.f32 %v875_v17, %v868_v12 }
 0x795   :  { %v881_v29 = vsel %vm204_vm3, %v879_v13, 0.0 }
 0x796   :  { %v882_v30 = vadd.f32 %v881_v29, %v877_v26  ;;  %v889_v31 = vsel %vm204_vm3, %v880_v27, 0.0 }
 0x797   :  { %v890_v35 = vadd.f32 %v889_v31, %v878_v28 }
 0x798   :  { %v883_v10 = vrot.slane %v882_v30, 4 }
 0x799   :  { %v891_v18 = vrot.slane %v890_v35, 4 }
 0x79a   :  { %v884_v19 = vadd.f32 %v883_v10, %v882_v30 }
 0x79b   :  { %v892_v21 = vadd.f32 %v891_v18, %v890_v35 }
 0x79c   :  { %v885_v36 = vrot.slane %v884_v19, 2 }
 0x79d   :  { %v893_v37 = vrot.slane %v892_v21, 2 }
 0x79e   :  { %v886_v22 = vadd.f32 %v885_v36, %v884_v19 }
 0x79f   :  { %v894_v38 = vadd.f32 %v893_v37, %v892_v21 }
 0x7a0   :  { %v887_v32 = vrot.slane %v886_v22, 1 }
 0x7a1   :  { %v895_v33 = vrot.slane %v894_v38, 1 }
 0x7a2   :  { %v888_v9 = vadd.f32 %v887_v32, %v886_v22 }
 0x7a3   :  { %v896_v34 = vadd.f32 %v895_v33, %v894_v38 }
 0x7a4   :  { %v899_v44 = vadd.f32 %v898_v43, %v888_v9 }
 0x7a5   :  { %v900_v45 = vadd.f32 %v898_v43, %v896_v34 }
 0x7a6   :  { %v2747_v46 = vadd.f32 %v899_v44, %v2709_v39  ;;  %v2750_v47 = vadd.f32 %v899_v44, %v2712_v40 }
 0x7a7   :  { %v2753_v48 = vadd.f32 %v900_v45, %v2718_v42  ;;  %v2759_v50 = vadd.f32 %v900_v45, %v2715_v41 }
 0x7a8   :  { %905 = vrot.lane.b32.xlu1 %v2747_v46, %s2487_s7  ;;  %v913_v51 = vrot.slane %v2747_v46, 4 }
 0x7a9   :  { %v914_v42 = vrot.slane %v2759_v50, 4 }
 0x7ac   :  { %907 = vrot.lane.b32.xlu1 %v2759_v50, %s2487_s7 }
 0x7b0   :  { %1038 = vperm.xlu1 %2160, %v2558_v5   ;;  %v2775_v5 = vld [vmem:[%s3139_s1 + $0x50] sm:$0xff] }
 0x7fc   :  { %v2788_v13 = vpop.permute.xlu0 %1042 }
 0x81a   :  { %v906_v39 = vpop.permute.xlu1 %905 }
 0x81e   :  { %v908_v40 = vpop.permute.xlu1 %907 }
 0x81f   :  { %v909_v52 = vsel %vm62_vm0, %v906_v39, %v908_v40  ;;  %v910_v14 = vsel %vm62_vm0, %v908_v40, %v906_v39 }
 0x820   :  { %v918_v41 = vsel %vm67_vm1, %v909_v52, %v914_v42  ;;  %v917_v53 = vsel %vm67_vm1, %v910_v14, %v913_v51 }
 0x821   :  { %928 = vmatprep.subr.mxu1 %v918_v41 }
 0x822   :  { %929 = vmatpush1.msra.mxu1 %v917_v53 }
 0x823   :  { %2027 = vmatmul.mubr.msk.f32.vlgmr.msra.gmra.mrb[4].mxu1 %vm72_vm2, %v2775_v5 }
 0x824   :  { %998 = vmatprep.mubr.f32.mxu1 %v2488_v2 }
 0x827   :  { %2028 = vmatmul.mubr.msk.f32.gmra.mrb[6].mxu1 %vm72_vm2, %v2783_v54 }
 0x828   :  { %1309 = vmatprep.mubr.f32.mxu1 %v2488_v2 }
 0x82f   :  { %v2790_v27 = vpop.permute.xlu1 %1038 }
 0x8f6   :  { %v994_v55 = vpop.f32.mrb[4].mxu1 }
 0x8f7   :  { %v2029_v56 = vmul.f32 -1.442695, %v994_v55  ;;  %v996_v57 = vpop.f32.mrb[5].mxu1 }
 0x8f8   :  { %v2030_v58 = vmul.f32 -1.442695, %v996_v57 }
 0x8f9   :  { %2287 = vpow2.f32 %v2029_v56 }
 0x8fa   :  { %2289 = vpow2.f32 %v2030_v58  ;;  %v1000_v59 = vpop.f32.mrb[6].mxu1 }
 0x8fb   :  { %v2031_v60 = vmul.f32 -1.442695, %v1000_v59  ;;  %v1002_v61 = vpop.f32.mrb[7].mxu1 }
 0x8fc   :  { %v2032_v62 = vmul.f32 -1.442695, %v1002_v61 }
 0x8fd   :  { %2291 = vpow2.f32 %v2031_v60 }
 0x8fe   :  { %2293 = vpow2.f32 %v2032_v62 }
 0x8ff   :  { %2295 = vtanh.f32 %v994_v55 }
 0x900   :  { %2297 = vtanh.f32 %v996_v57 }
 0x901   :  { %2299 = vtanh.f32 %v1000_v59 }
 0x903   :  { %v2288_v63 = vpop.eup %2287 }
 0x904   :  { %v2290_v3 = vpop.eup %2289  ;;  %v1021_v4 = vadd.f32 1.0, %v2288_v63 }
 0x905   :  { %v1022_v6 = vadd.f32 1.0, %v2290_v3 }
 0x906   :  { %2301 = vrcp.f32 %v1021_v4 }
 0x907   :  { %v2292_v8 = vpop.eup %2291  ;;  %2303 = vrcp.f32 %v1022_v6 }
 0x908   :  { %v2294_v11 = vpop.eup %2293  ;;  %v1023_v0 = vadd.f32 1.0, %v2292_v8  ;;  %2305 = vtanh.f32 %v1002_v61 }
 0x909   :  { %v1024_v15 = vadd.f32 1.0, %v2294_v11  ;;  %v2296_v1 = vpop.eup %2295 }
 0x90a   :  { %2307 = vrcp.f32 %v1023_v0  ;;  %v2298_v16 = vpop.eup %2297 }
 0x90b   :  { %2309 = vrcp.f32 %v1024_v15  ;;  %v2300_v17 = vpop.eup %2299 }
 0x910   :  { %v2302_v20 = vpop.eup %2301 }
 0x911   :  { %v2304_v23 = vpop.eup %2303  ;;  %v1033_v12 = vmul.f32 %v2302_v20, %v2296_v1 }
 0x912   :  { %v2306_v24 = vpop.eup %2305  ;;  %v1034_v28 = vmul.f32 %v2304_v23, %v2298_v16 }
 0x913   :  { %v1045_v35 = vmul.f32 %v2790_v27, %v1033_v12 }
 0x914   :  { %v2308_v25 = vpop.eup %2307  ;;  %v1046_v18 = vmul.f32 %v2790_v27, %v1034_v28 }
 0x915   :  { %v2310_v26 = vpop.eup %2309  ;;  %v1035_v29 = vmul.f32 %v2308_v25, %v2300_v17 }
 0x916   :  { %v1036_v30 = vmul.f32 %v2310_v26, %v2306_v24 }
 0x917   :  { %v1047_v31 = vmul.f32 %v2788_v13, %v1035_v29 }
 0x918   :  { %v1048_v10 = vmul.f32 %v2788_v13, %v1036_v30 }
 0x919   :  { %v1049_v19 = vsel %vm204_vm3, %v1047_v31, 0.0 }
 0x91a   :  { %v1050_v21 = vadd.f32 %v1049_v19, %v1045_v35  ;;  %v1057_v36 = vsel %vm204_vm3, %v1048_v10, 0.0 }
 0x91b   :  { %v1058_v37 = vadd.f32 %v1057_v36, %v1046_v18 }
 0x91c   :  { %v1051_v22 = vrot.slane %v1050_v21, 4 }
 0x91d   :  { %v1059_v38 = vrot.slane %v1058_v37, 4 }
 0x91e   :  { %v1052_v32 = vadd.f32 %v1051_v22, %v1050_v21 }
 0x91f   :  { %v1060_v43 = vadd.f32 %v1059_v38, %v1058_v37 }
 0x920   :  { %v1053_v33 = vrot.slane %v1052_v32, 2 }
 0x921   :  { %v1061_v9 = vrot.slane %v1060_v43, 2 }
 0x922   :  { %v1054_v34 = vadd.f32 %v1053_v33, %v1052_v32 }
 0x923   :  { %v1062_v44 = vadd.f32 %v1061_v9, %v1060_v43 }
 0x924   :  { %v1055_v45 = vrot.slane %v1054_v34, 1 }
 0x925   :  { %v1063_v39 = vrot.slane %v1062_v44, 1 }
 0x926   :  { %v1056_v40 = vadd.f32 %v1055_v45, %v1054_v34 }
 0x927   :  { %v1064_v42 = vadd.f32 %v1063_v39, %v1062_v44 }
 0x928   :  { %v1067_v51 = vadd.f32 %v2798_v49, %v1056_v40 }
 0x929   :  { %v1068_v52 = vadd.f32 %v2798_v49, %v1064_v42 }
 0x92a   :  { %v2803_v14 = vadd.f32 %v1067_v51, %v2747_v46  ;;  %v2806_v41 = vadd.f32 %v1067_v51, %v2750_v47 }
 0x92b   :  { %v2809_v53 = vadd.f32 %v1068_v52, %v2759_v50  ;;  %v2812_v55 = vadd.f32 %v1068_v52, %v2753_v48 }
 0x92c   :  { %1073 = vrot.lane.b32.xlu1 %v2803_v14, %s2487_s7  ;;  %v1081_v58 = vrot.slane %v2803_v14, 4 }
 0x92d   :  { %1075 = vrot.lane.b32.xlu0 %v2809_v53, %s2487_s7  ;;  %v1082_v46 = vrot.slane %v2809_v53, 4 }
 0x99e   :  { %v1074_v56 = vpop.permute.xlu1 %1073 }
 0x99f   :  { %v1076_v57 = vpop.permute.xlu0 %1075 }
 0x9a0   :  { %v1077_v47 = vsel %vm62_vm0, %v1074_v56, %v1076_v57  ;;  %v1078_v50 = vsel %vm62_vm0, %v1076_v57, %v1074_v56  ;;  %v2495_v57 = vmov 6  }
 0x9a1   :  { %v1086_v48 = vsel %vm67_vm1, %v1077_v47, %v1082_v46  ;;  %v1085_v59 = vsel %vm67_vm1, %v1078_v50, %v1081_v58  ;;  %2162 = vset.pattern.permute.xlu0 %v2495_v57  ;;  %2161 = vset.pattern.permute.xlu1 %v2495_v57 }
 0x9a2   :  { %1087 = vmatprep.subr.mxu0 %v1086_v48 }
 0x9a3   :  { %1088 = vmatpush1.msra.mxu0 %v1085_v59 }
 0x9a4   :  { %2034 = vmatmul.mubr.msk.f32.vlgmr.msra.gmra.mrb[16].mxu0 %vm72_vm2, %v2775_v5 }
 0x9a5   :  { %1157 = vmatprep.mubr.f32.mxu0 %v2488_v2 }
 0x9a8   :  { %2035 = vmatmul.mubr.msk.f32.gmra.mrb[18].mxu0 %vm72_vm2, %v2783_v54 }
 0x9a9   :  { %1468 = vmatprep.mubr.f32.mxu0 %v2488_v2 }
 0xa77   :  { %v1153_v60 = vpop.f32.mrb[16].mxu0 }
 0xa78   :  { %v2036_v61 = vmul.f32 -1.442695, %v1153_v60  ;;  %v1155_v62 = vpop.f32.mrb[17].mxu0 }
 0xa79   :  { %v2037_v63 = vmul.f32 -1.442695, %v1155_v62 }
 0xa7a   :  { %2311 = vpow2.f32 %v2036_v61 }
 0xa7b   :  { %2313 = vpow2.f32 %v2037_v63  ;;  %v1159_v3 = vpop.f32.mrb[18].mxu0  ;;  %v2879_v63 = vld [vmem:[%s3139_s1 + $0x60] sm:$0xff] }
 0xa7c   :  { %v2038_v4 = vmul.f32 -1.442695, %v1159_v3  ;;  %v1161_v6 = vpop.f32.mrb[19].mxu0 }
 0xa7d   :  { %v2039_v8 = vmul.f32 -1.442695, %v1161_v6 }
 0xa7e   :  { %2315 = vpow2.f32 %v2038_v4 }
 0xa7f   :  { %2317 = vpow2.f32 %v2039_v8 }
 0xa80   :  { %2319 = vtanh.f32 %v1153_v60 }
 0xa81   :  { %2321 = vtanh.f32 %v1155_v62 }
 0xa82   :  { %2323 = vtanh.f32 %v1159_v3  ;;  %v2887_v3 = vld [vmem:[%s3139_s1 + $0x68] sm:$0x3] }
 0xa84   :  { %v2312_v5 = vpop.eup %2311 }
 0xa85   :  { %v2314_v11 = vpop.eup %2313  ;;  %v1180_v0 = vadd.f32 1.0, %v2312_v5 }
 0xa86   :  { %v1181_v54 = vadd.f32 1.0, %v2314_v11 }
 0xa87   :  { %2325 = vrcp.f32 %v1180_v0 }
 0xa88   :  { %v2316_v15 = vpop.eup %2315  ;;  %2327 = vrcp.f32 %v1181_v54 }
 0xa89   :  { %v2318_v1 = vpop.eup %2317  ;;  %v1182_v16 = vadd.f32 1.0, %v2316_v15  ;;  %2329 = vtanh.f32 %v1161_v6 }
 0xa8a   :  { %v1183_v17 = vadd.f32 1.0, %v2318_v1  ;;  %v2320_v20 = vpop.eup %2319 }
 0xa8b   :  { %2331 = vrcp.f32 %v1182_v16  ;;  %v2322_v23 = vpop.eup %2321 }
 0xa8c   :  { %2333 = vrcp.f32 %v1183_v17  ;;  %v2324_v24 = vpop.eup %2323 }
 0xa91   :  { %v2326_v25 = vpop.eup %2325 }
 0xa92   :  { %v2328_v12 = vpop.eup %2327  ;;  %v1192_v29 = vmul.f32 %v2326_v25, %v2320_v20 }
 0xa93   :  { %v2330_v26 = vpop.eup %2329  ;;  %v1193_v31 = vmul.f32 %v2328_v12, %v2322_v23 }
 0xa94   :  { %v1196_v19 = vmul.f32 %v1192_v29, %v2790_v27 }
 0xa95   :  { %v2332_v28 = vpop.eup %2331  ;;  %v1197_v36 = vmul.f32 %v1193_v31, %v2790_v27 }
 0xa96   :  { %v2334_v30 = vpop.eup %2333  ;;  %v1194_v35 = vmul.f32 %v2332_v28, %v2324_v24 }
 0xa97   :  { %v1195_v10 = vmul.f32 %v2334_v30, %v2330_v26 }
 0xa98   :  { %v1198_v18 = vmul.f32 %v1194_v35, %v2788_v13 }
 0xa99   :  { %v1199_v21 = vmul.f32 %v1195_v10, %v2788_v13 }
 0xa9a   :  { %v1200_v37 = vsel %vm204_vm3, %v1198_v18, 0.0 }
 0xa9b   :  { %v1201_v22 = vadd.f32 %v1200_v37, %v1196_v19  ;;  %v1208_v38 = vsel %vm204_vm3, %v1199_v21, 0.0 }
 0xa9c   :  { %v1209_v32 = vadd.f32 %v1208_v38, %v1197_v36 }
 0xa9d   :  { %v1202_v43 = vrot.slane %v1201_v22, 4 }
 0xa9e   :  { %v1210_v33 = vrot.slane %v1209_v32, 4 }
 0xa9f   :  { %v1203_v9 = vadd.f32 %v1202_v43, %v1201_v22 }
 0xaa0   :  { %v1211_v34 = vadd.f32 %v1210_v33, %v1209_v32 }
 0xaa1   :  { %v1204_v44 = vrot.slane %v1203_v9, 2 }
 0xaa2   :  { %v1212_v45 = vrot.slane %v1211_v34, 2 }
 0xaa3   :  { %v1205_v39 = vadd.f32 %v1204_v44, %v1203_v9 }
 0xaa4   :  { %v1213_v40 = vadd.f32 %v1212_v45, %v1211_v34 }
 0xaa5   :  { %v1206_v42 = vrot.slane %v1205_v39, 1 }
 0xaa6   :  { %v1214_v51 = vrot.slane %v1213_v40, 1 }
 0xaa7   :  { %v1207_v52 = vadd.f32 %v1206_v42, %v1205_v39 }
 0xaa8   :  { %v1215_v13 = vadd.f32 %v1214_v51, %v1213_v40 }
 0xaa9   :  { %v1216_v27 = vadd.f32 %v1207_v52, %v2798_v49 }
 0xaaa   :  { %v1217_v56 = vadd.f32 %v1215_v13, %v2798_v49  ;;  %v2859_v49 = vld [vmem:[%s3140_s2 + $0x8] sm:$0x3] }
 0xaab   :  { %v2841_v46 = vadd.f32 %v1216_v27, %v2803_v14  ;;  %v2844_v58 = vadd.f32 %v1216_v27, %v2806_v41  ;;  %v2865_v14 = vld [vmem:[%s3140_s2] sm:$0xff] }
 0xaac   :  { %v2847_v47 = vadd.f32 %v1217_v56, %v2809_v53  ;;  %v2850_v50 = vadd.f32 %v1217_v56, %v2812_v55 }
 0xaad   :  { %1222 = vrot.lane.b32.xlu1 %v2841_v46, %s2487_s7  ;;  %v1230_v48 = vrot.slane %v2841_v46, 4 }
 0xaae   :  { %1224 = vrot.lane.b32.xlu0 %v2847_v47, %s2487_s7  ;;  %v1231_v55 = vrot.slane %v2847_v47, 4 }
 0xab1   :  { %1359 = vperm.xlu1 %2161, %v2859_v49  }
 0xab2   :  { %1355 = vperm.xlu0 %2162, %v2865_v14  }
 0xb1f   :  { %v1223_v41 = vpop.permute.xlu1 %1222 }
 0xb20   :  { %v1225_v53 = vpop.permute.xlu0 %1224 }
 0xb21   :  { %v1226_v59 = vsel %vm62_vm0, %v1223_v41, %v1225_v53  ;;  %v1227_v60 = vsel %vm62_vm0, %v1225_v53, %v1223_v41  ;;  %v2902_v53 = vstv %s2048_s24 }
 0xb22   :  { %v1235_v61 = vsel %vm67_vm1, %v1226_v59, %v1231_v55  ;;  %v1234_v62 = vsel %vm67_vm1, %v1227_v60, %v1230_v48 }
 0xb23   :  { %1245 = vmatprep.subr.mxu1 %v1235_v61 }
 0xb24   :  { %1246 = vmatpush1.msra.mxu1 %v1234_v62 }
 0xb25   :  { %2042 = vmatmul.mubr.msk.f32.vlgmr.msra.gmra.mrb[8].mxu1 %vm72_vm2, %v2879_v63 }
 0xb26   :  { %1315 = vmatprep.mubr.f32.mxu1 %v2488_v2 }
 0xb29   :  { %2043 = vmatmul.mubr.msk.f32.gmra.mrb[10].mxu1 %vm72_vm2, %v2887_v3 }
 0xb2a   :  { %1626 = vmatprep.mubr.f32.mxu1 %v2488_v2 }
 0xb30   :  { %v2892_v19 = vpop.permute.xlu1 %1359 }
 0xb31   :  { %v2894_v36 = vpop.permute.xlu0 %1355 }
 0xbf8   :  { %v1311_v4 = vpop.f32.mrb[8].mxu1 }
 0xbf9   :  { %v2044_v6 = vmul.f32 -1.442695, %v1311_v4  ;;  %v1313_v8 = vpop.f32.mrb[9].mxu1 }
 0xbfa   :  { %v2045_v5 = vmul.f32 -1.442695, %v1313_v8 }
 0xbfb   :  { %2335 = vpow2.f32 %v2044_v6 }
 0xbfc   :  { %2337 = vpow2.f32 %v2045_v5  ;;  %v1317_v11 = vpop.f32.mrb[10].mxu1 }
 0xbfd   :  { %v2046_v0 = vmul.f32 -1.442695, %v1317_v11  ;;  %v1319_v54 = vpop.f32.mrb[11].mxu1 }
 0xbfe   :  { %v2047_v15 = vmul.f32 -1.442695, %v1319_v54 }
 0xbff   :  { %2339 = vpow2.f32 %v2046_v0 }
 0xc00   :  { %2341 = vpow2.f32 %v2047_v15 }
 0xc01   :  { %2343 = vtanh.f32 %v1311_v4 }
 0xc02   :  { %2345 = vtanh.f32 %v1313_v8 }
 0xc03   :  { %2347 = vtanh.f32 %v1317_v11 }
 0xc05   :  { %v2336_v1 = vpop.eup %2335 }
 0xc06   :  { %v2338_v16 = vpop.eup %2337  ;;  %v1338_v17 = vadd.f32 1.0, %v2336_v1 }
 0xc07   :  { %v1339_v20 = vadd.f32 1.0, %v2338_v16 }
 0xc08   :  { %2349 = vrcp.f32 %v1338_v17 }
 0xc09   :  { %v2340_v23 = vpop.eup %2339  ;;  %2351 = vrcp.f32 %v1339_v20 }
 0xc0a   :  { %v2342_v24 = vpop.eup %2341  ;;  %v1340_v25 = vadd.f32 1.0, %v2340_v23  ;;  %2353 = vtanh.f32 %v1319_v54 }
 0xc0b   :  { %v1341_v12 = vadd.f32 1.0, %v2342_v24  ;;  %v2344_v26 = vpop.eup %2343 }
 0xc0c   :  { %2355 = vrcp.f32 %v1340_v25  ;;  %v2346_v28 = vpop.eup %2345 }
 0xc0d   :  { %2357 = vrcp.f32 %v1341_v12  ;;  %v2348_v29 = vpop.eup %2347 }
 0xc12   :  { %v2350_v30 = vpop.eup %2349 }
 0xc13   :  { %v2352_v31 = vpop.eup %2351  ;;  %v1350_v18 = vmul.f32 %v2350_v30, %v2344_v26 }
 0xc14   :  { %v2354_v35 = vpop.eup %2353  ;;  %v1351_v37 = vmul.f32 %v2352_v31, %v2346_v28 }
 0xc15   :  { %v1362_v43 = vmul.f32 %v2894_v36, %v1350_v18 }
 0xc16   :  { %v2356_v10 = vpop.eup %2355  ;;  %v1363_v9 = vmul.f32 %v2894_v36, %v1351_v37 }
 0xc17   :  { %v2358_v21 = vpop.eup %2357  ;;  %v1352_v22 = vmul.f32 %v2356_v10, %v2348_v29 }
 0xc18   :  { %v1353_v38 = vmul.f32 %v2358_v21, %v2354_v35 }
 0xc19   :  { %v1364_v32 = vmul.f32 %v2892_v19, %v1352_v22 }
 0xc1a   :  { %v1365_v33 = vmul.f32 %v2892_v19, %v1353_v38 }
 0xc1b   :  { %v1366_v34 = vsel %vm204_vm3, %v1364_v32, 0.0 }
 0xc1c   :  { %v1367_v44 = vadd.f32 %v1366_v34, %v1362_v43  ;;  %v1374_v45 = vsel %vm204_vm3, %v1365_v33, 0.0 }
 0xc1d   :  { %v1375_v39 = vadd.f32 %v1374_v45, %v1363_v9 }
 0xc1e   :  { %v1368_v40 = vrot.slane %v1367_v44, 4 }
 0xc1f   :  { %v1376_v42 = vrot.slane %v1375_v39, 4 }
 0xc20   :  { %v1369_v51 = vadd.f32 %v1368_v40, %v1367_v44 }
 0xc21   :  { %v1377_v52 = vadd.f32 %v1376_v42, %v1375_v39 }
 0xc22   :  { %v1370_v13 = vrot.slane %v1369_v51, 2 }
 0xc23   :  { %v1378_v27 = vrot.slane %v1377_v52, 2 }
 0xc24   :  { %v1371_v56 = vadd.f32 %v1370_v13, %v1369_v51 }
 0xc25   :  { %v1379_v57 = vadd.f32 %v1378_v27, %v1377_v52 }
 0xc26   :  { %v1372_v41 = vrot.slane %v1371_v56, 1 }
 0xc27   :  { %v1380_v55 = vrot.slane %v1379_v57, 1 }
 0xc28   :  { %v1373_v48 = vadd.f32 %v1372_v41, %v1371_v56 }
 0xc29   :  { %v1381_v59 = vadd.f32 %v1380_v55, %v1379_v57 }
 0xc2a   :  { %v1384_v60 = vadd.f32 %v2902_v53, %v1373_v48 }
 0xc2b   :  { %v1385_v61 = vadd.f32 %v2902_v53, %v1381_v59 }
 0xc2c   :  { %v2907_v62 = vadd.f32 %v1384_v60, %v2841_v46  ;;  %v2910_v4 = vadd.f32 %v1384_v60, %v2844_v58 }
 0xc2d   :  { %v2913_v6 = vadd.f32 %v1385_v61, %v2850_v50  ;;  %v2918_v8 = vadd.f32 %v1385_v61, %v2847_v47 }
 0xc2e   :  { %1390 = vrot.lane.b32.xlu1 %v2907_v62, %s2487_s7  ;;  %v1398_v0 = vrot.slane %v2907_v62, 4 }
 0xc2f   :  { %v1399_v46 = vrot.slane %v2918_v8, 4 }
 0xc32   :  { %1392 = vrot.lane.b32.xlu1 %v2918_v8, %s2487_s7 }
 0xca0   :  { %v1391_v5 = vpop.permute.xlu1 %1390 }
 0xca4   :  { %v1393_v11 = vpop.permute.xlu1 %1392 }
 0xca5   :  { %v1394_v58 = vsel %vm62_vm0, %v1391_v5, %v1393_v11  ;;  %v1395_v50 = vsel %vm62_vm0, %v1393_v11, %v1391_v5 }
 0xca6   :  { %v1403_v54 = vsel %vm67_vm1, %v1394_v58, %v1399_v46  ;;  %v1402_v47 = vsel %vm67_vm1, %v1395_v50, %v1398_v0  ;;  %v2496_v0 = vmov 7  }
 0xca7   :  { %1404 = vmatprep.subr.mxu0 %v1403_v54  ;;  %2164 = vset.pattern.permute.xlu1 %v2496_v0 }
 0xca8   :  { %1405 = vmatpush1.msra.mxu0 %v1402_v47  ;;  %2163 = vset.pattern.permute.xlu0 %v2496_v0 }
 0xca9   :  { %2049 = vmatmul.mubr.msk.f32.vlgmr.msra.gmra.mrb[20].mxu0 %vm72_vm2, %v2879_v63 }
 0xcaa   :  { %1474 = vmatprep.mubr.f32.mxu0 %v2488_v2 }
 0xcad   :  { %2050 = vmatmul.mubr.msk.f32.gmra.mrb[22].mxu0 %vm72_vm2, %v2887_v3 }
 0xcae   :  { %1785 = vmatprep.mubr.f32.mxu0 %v2488_v2 }
 0xd7c   :  { %v1470_v15 = vpop.f32.mrb[20].mxu0 }
 0xd7d   :  { %v2051_v1 = vmul.f32 -1.442695, %v1470_v15  ;;  %v1472_v16 = vpop.f32.mrb[21].mxu0 }
 0xd7e   :  { %v2052_v17 = vmul.f32 -1.442695, %v1472_v16 }
 0xd7f   :  { %2359 = vpow2.f32 %v2051_v1 }
 0xd80   :  { %2361 = vpow2.f32 %v2052_v17  ;;  %v1476_v20 = vpop.f32.mrb[22].mxu0 }
 0xd81   :  { %v2053_v23 = vmul.f32 -1.442695, %v1476_v20  ;;  %v1478_v24 = vpop.f32.mrb[23].mxu0 }
 0xd82   :  { %v2054_v25 = vmul.f32 -1.442695, %v1478_v24 }
 0xd83   :  { %2363 = vpow2.f32 %v2053_v23 }
 0xd84   :  { %2365 = vpow2.f32 %v2054_v25 }
 0xd85   :  { %2367 = vtanh.f32 %v1470_v15 }
 0xd86   :  { %2369 = vtanh.f32 %v1472_v16 }
 0xd87   :  { %2371 = vtanh.f32 %v1476_v20 }
 0xd89   :  { %v2360_v63 = vpop.eup %2359 }
 0xd8a   :  { %v2362_v12 = vpop.eup %2361  ;;  %v1497_v26 = vadd.f32 1.0, %v2360_v63 }
 0xd8b   :  { %v1498_v3 = vadd.f32 1.0, %v2362_v12 }
 0xd8c   :  { %2373 = vrcp.f32 %v1497_v26 }
 0xd8d   :  { %v2364_v28 = vpop.eup %2363  ;;  %2375 = vrcp.f32 %v1498_v3 }
 0xd8e   :  { %v2366_v29 = vpop.eup %2365  ;;  %v1499_v30 = vadd.f32 1.0, %v2364_v28  ;;  %2377 = vtanh.f32 %v1478_v24 }
 0xd8f   :  { %v1500_v31 = vadd.f32 1.0, %v2366_v29  ;;  %v2368_v35 = vpop.eup %2367 }
 0xd90   :  { %2379 = vrcp.f32 %v1499_v30  ;;  %v2370_v10 = vpop.eup %2369 }
 0xd91   :  { %2381 = vrcp.f32 %v1500_v31  ;;  %v2372_v18 = vpop.eup %2371 }
 0xd96   :  { %v2374_v21 = vpop.eup %2373 }
 0xd97   :  { %v2376_v37 = vpop.eup %2375  ;;  %v1509_v32 = vmul.f32 %v2374_v21, %v2368_v35 }
 0xd98   :  { %v2378_v22 = vpop.eup %2377  ;;  %v1510_v33 = vmul.f32 %v2376_v37, %v2370_v10 }
 0xd99   :  { %v1513_v45 = vmul.f32 %v1509_v32, %v2894_v36 }
 0xd9a   :  { %v2380_v38 = vpop.eup %2379  ;;  %v1514_v40 = vmul.f32 %v1510_v33, %v2894_v36 }
 0xd9b   :  { %v2382_v43 = vpop.eup %2381  ;;  %v1511_v9 = vmul.f32 %v2380_v38, %v2372_v18 }
 0xd9c   :  { %v1512_v34 = vmul.f32 %v2382_v43, %v2378_v22 }
 0xd9d   :  { %v1515_v44 = vmul.f32 %v1511_v9, %v2892_v19 }
 0xd9e   :  { %v1516_v39 = vmul.f32 %v1512_v34, %v2892_v19 }
 0xd9f   :  { %v1517_v42 = vsel %vm204_vm3, %v1515_v44, 0.0 }
 0xda0   :  { %v1518_v51 = vadd.f32 %v1517_v42, %v1513_v45  ;;  %v1525_v52 = vsel %vm204_vm3, %v1516_v39, 0.0 }
 0xda1   :  { %v1526_v13 = vadd.f32 %v1525_v52, %v1514_v40 }
 0xda2   :  { %v1519_v27 = vrot.slane %v1518_v51, 4 }
 0xda3   :  { %v1527_v56 = vrot.slane %v1526_v13, 4 }
 0xda4   :  { %v1520_v57 = vadd.f32 %v1519_v27, %v1518_v51 }
 0xda5   :  { %v1528_v41 = vadd.f32 %v1527_v56, %v1526_v13 }
 0xda6   :  { %v1521_v55 = vrot.slane %v1520_v57, 2 }
 0xda7   :  { %v1529_v48 = vrot.slane %v1528_v41, 2 }
 0xda8   :  { %v1522_v59 = vadd.f32 %v1521_v55, %v1520_v57 }
 0xda9   :  { %v1530_v60 = vadd.f32 %v1529_v48, %v1528_v41 }
 0xdaa   :  { %v1523_v61 = vrot.slane %v1522_v59, 1 }
 0xdab   :  { %v1531_v5 = vrot.slane %v1530_v60, 1 }
 0xdac   :  { %v1524_v11 = vadd.f32 %v1523_v61, %v1522_v59 }
 0xdad   :  { %v1532_v19 = vadd.f32 %v1531_v5, %v1530_v60 }
 0xdae   :  { %v1533_v36 = vadd.f32 %v1524_v11, %v2902_v53 }
 0xdaf   :  { %v1534_v46 = vadd.f32 %v1532_v19, %v2902_v53 }
 0xdb0   :  { %v2945_v58 = vadd.f32 %v1533_v36, %v2907_v62  ;;  %v2948_v50 = vadd.f32 %v1533_v36, %v2910_v4 }
 0xdb1   :  { %v2951_v54 = vadd.f32 %v1534_v46, %v2918_v8  ;;  %v2954_v47 = vadd.f32 %v1534_v46, %v2913_v6 }
 0xdb2   :  { %1539 = vrot.lane.b32.xlu0 %v2945_v58, %s2487_s7  ;;  %v1547_v8 = vrot.slane %v2945_v58, 4 }
 0xdb3   :  { %1541 = vrot.lane.b32.xlu1 %v2951_v54, %s2487_s7  ;;  %v1548_v4 = vrot.slane %v2951_v54, 4 }
 0xdb6   :  { %1676 = vperm.xlu0 %2163, %v2859_v49   ;;  %v2973_v49 = vld [vmem:[%s3139_s1 + $0x70] sm:$0xff] }
 0xdb7   :  { %1672 = vperm.xlu1 %2164, %v2865_v14   ;;  %v2981_v14 = vld [vmem:[%s3139_s1 + $0x78] sm:$0x3]  ;;  %s2063_s1 = sld [smem:[#allocation2 + $0x7]] }
 0xdbd   :  { %v2995_v0 = vstv %s2063_s1 }
 0xe24   :  { %v1540_v53 = vpop.permute.xlu0 %1539 }
 0xe25   :  { %v1542_v62 = vpop.permute.xlu1 %1541 }
 0xe26   :  { %v1543_v6 = vsel %vm62_vm0, %v1540_v53, %v1542_v62  ;;  %v1544_v15 = vsel %vm62_vm0, %v1542_v62, %v1540_v53 }
 0xe27   :  { %v1552_v1 = vsel %vm67_vm1, %v1543_v6, %v1548_v4  ;;  %v1551_v16 = vsel %vm67_vm1, %v1544_v15, %v1547_v8 }
 0xe28   :  { %1562 = vmatprep.subr.mxu1 %v1552_v1 }
 0xe29   :  { %1563 = vmatpush1.msra.mxu1 %v1551_v16 }
 0xe2a   :  { %2057 = vmatmul.mubr.msk.f32.vlgmr.msra.gmra.mrb[12].mxu1 %vm72_vm2, %v2973_v49 }
 0xe2b   :  { %1632 = vmatprep.mubr.f32.mxu1 %v2488_v2 }
 0xe2e   :  { %2058 = vmatmul.mubr.msk.f32.gmra.mrb[14].mxu1 %vm72_vm2, %v2981_v14 }
 0xe35   :  { %v2985_v34 = vpop.permute.xlu0 %1676 }
 0xe36   :  { %v2987_v45 = vpop.permute.xlu1 %1672 }
 0xefd   :  { %v1628_v17 = vpop.f32.mrb[12].mxu1 }
 0xefe   :  { %v2059_v20 = vmul.f32 -1.442695, %v1628_v17  ;;  %v1630_v23 = vpop.f32.mrb[13].mxu1 }
 0xeff   :  { %v2060_v24 = vmul.f32 -1.442695, %v1630_v23 }
 0xf00   :  { %2383 = vpow2.f32 %v2059_v20 }
 0xf01   :  { %2385 = vpow2.f32 %v2060_v24  ;;  %v1634_v25 = vpop.f32.mrb[14].mxu1 }
 0xf02   :  { %v2061_v63 = vmul.f32 -1.442695, %v1634_v25  ;;  %v1636_v12 = vpop.f32.mrb[15].mxu1 }
 0xf03   :  { %v2062_v26 = vmul.f32 -1.442695, %v1636_v12 }
 0xf04   :  { %2387 = vpow2.f32 %v2061_v63 }
 0xf05   :  { %2389 = vpow2.f32 %v2062_v26  ;;  %v1860_v26 = vld [vmem:[%s3141_s3] sm:$0xff] }
 0xf06   :  { %2391 = vtanh.f32 %v1628_v17 }
 0xf07   :  { %2393 = vtanh.f32 %v1630_v23 }
 0xf08   :  { %2395 = vtanh.f32 %v1634_v25 }
 0xf0a   :  { %v2384_v3 = vpop.eup %2383 }
 0xf0b   :  { %v2386_v28 = vpop.eup %2385  ;;  %v1655_v29 = vadd.f32 1.0, %v2384_v3  ;;  %v1879_v3 = vld [vmem:[%s3141_s3 + $0x98] sm:$0xff] }
 0xf0c   :  { %v1656_v30 = vadd.f32 1.0, %v2386_v28 }
 0xf0d   :  { %2397 = vrcp.f32 %v1655_v29  ;;  %v1862_v29 = vld [vmem:[%s3141_s3 + $0x10] sm:$0xff] }
 0xf0e   :  { %v2388_v31 = vpop.eup %2387  ;;  %2399 = vrcp.f32 %v1656_v30  ;;  %v1863_v30 = vld [vmem:[%s3141_s3 + $0x18] sm:$0xff] }
 0xf0f   :  { %v2390_v35 = vpop.eup %2389  ;;  %v1657_v10 = vadd.f32 1.0, %v2388_v31  ;;  %2401 = vtanh.f32 %v1636_v12  ;;  %v2111_v31 = vpack.c.bf16 %v1863_v30, %v1862_v29 }
 0xf10   :  { %v1658_v18 = vadd.f32 1.0, %v2390_v35  ;;  %v2392_v21 = vpop.eup %2391  ;;  %v1880_v35 = vld [vmem:[%s3141_s3 + $0xa0] sm:$0xff] }
 0xf11   :  { %2403 = vrcp.f32 %v1657_v10  ;;  %v2394_v37 = vpop.eup %2393  ;;  %v1881_v10 = vld [vmem:[%s3141_s3 + $0xa8] sm:$0xff] }
 0xf12   :  { %2405 = vrcp.f32 %v1658_v18  ;;  %v2396_v22 = vpop.eup %2395  ;;  %v2113_v18 = vpack.c.bf16 %v1881_v10, %v1880_v35 }
 0xf17   :  { %v2398_v38 = vpop.eup %2397 }
 0xf18   :  { %v2400_v32 = vpop.eup %2399  ;;  %v1667_v9 = vmul.f32 %v2398_v38, %v2392_v21  ;;  %v1864_v21 = vld [vmem:[%s3141_s3 + $0x20] sm:$0xff]  ;;  %v1882_v38 = vld [vmem:[%s3141_s3 + $0xb0] sm:$0xff] }
 0xf19   :  { %v2402_v43 = vpop.eup %2401  ;;  %v1668_v39 = vmul.f32 %v2400_v32, %v2394_v37  ;;  %v1865_v37 = vld [vmem:[%s3141_s3 + $0x28] sm:$0xff]  ;;  %v1883_v32 = vld [vmem:[%s3141_s3 + $0xb8] sm:$0xff] }
 0xf1a   :  { %v1679_v52 = vmul.f32 %v2987_v45, %v1667_v9  ;;  %v1867_v9 = vld [vmem:[%s3141_s3 + $0x38] sm:$0xff] }
 0xf1b   :  { %v2404_v33 = vpop.eup %2403  ;;  %v1680_v27 = vmul.f32 %v2987_v45, %v1668_v39 }
 0xf1c   :  { %v2406_v44 = vpop.eup %2405  ;;  %v1669_v40 = vmul.f32 %v2404_v33, %v2396_v22  ;;  %v2115_v22 = vpack.c.bf16 %v1865_v37, %v1864_v21  ;;  %v1866_v33 = vld [vmem:[%s3141_s3 + $0x30] sm:$0xff] }
 0xf1d   :  { %v1670_v42 = vmul.f32 %v2406_v44, %v2402_v43  ;;  %v2117_v43 = vpack.c.bf16 %v1883_v32, %v1882_v38  ;;  %v1884_v44 = vld [vmem:[%s3141_s3 + $0xc0] sm:$0xff]  ;;  %v2119_v39 = vpack.c.bf16 %v1867_v9, %v1866_v33 }
 0xf1e   :  { %v1681_v51 = vmul.f32 %v2985_v34, %v1669_v40  ;;  %v1885_v40 = vld [vmem:[%s3141_s3 + $0xc8] sm:$0xff] }
 0xf1f   :  { %v1682_v13 = vmul.f32 %v2985_v34, %v1670_v42  ;;  %v1868_v42 = vld [vmem:[%s3141_s3 + $0x40] sm:$0xff] }
 0xf20   :  { %v1683_v56 = vsel %vm204_vm3, %v1681_v51, 0.0  ;;  %v1869_v51 = vld [vmem:[%s3141_s3 + $0x48] sm:$0xff] }
 0xf21   :  { %v1684_v57 = vadd.f32 %v1683_v56, %v1679_v52  ;;  %v1691_v41 = vsel %vm204_vm3, %v1682_v13, 0.0  ;;  %v2121_v52 = vpack.c.bf16 %v1885_v40, %v1884_v44  ;;  %v1886_v13 = vld [vmem:[%s3141_s3 + $0xd0] sm:$0xff]  ;;  %v2123_v56 = vpack.c.bf16 %v1869_v51, %v1868_v42 }
 0xf22   :  { %v1692_v55 = vadd.f32 %v1691_v41, %v1680_v27  ;;  %v1887_v27 = vld [vmem:[%s3141_s3 + $0xd8] sm:$0xff]  ;;  %v1870_v41 = vld [vmem:[%s3141_s3 + $0x50] sm:$0xff] }
 0xf23   :  { %v1685_v48 = vrot.slane %v1684_v57, 4 }
 0xf24   :  { %v1693_v59 = vrot.slane %v1692_v55, 4 }
 0xf25   :  { %v1686_v60 = vadd.f32 %v1685_v48, %v1684_v57  ;;  %v2125_v57 = vpack.c.bf16 %v1887_v27, %v1886_v13  ;;  %v1888_v48 = vld [vmem:[%s3141_s3 + $0xe0] sm:$0xff] }
 0xf26   :  { %v1694_v61 = vadd.f32 %v1693_v59, %v1692_v55  ;;  %v1871_v55 = vld [vmem:[%s3141_s3 + $0x58] sm:$0xff]  ;;  %v1889_v59 = vld [vmem:[%s3141_s3 + $0xe8] sm:$0xff] }
 0xf27   :  { %v1687_v5 = vrot.slane %v1686_v60, 2 }
 0xf28   :  { %v1695_v11 = vrot.slane %v1694_v61, 2 }
 0xf29   :  { %v1688_v19 = vadd.f32 %v1687_v5, %v1686_v60  ;;  %v2127_v60 = vpack.c.bf16 %v1871_v55, %v1870_v41  ;;  %v1872_v5 = vld [vmem:[%s3141_s3 + $0x60] sm:$0xff] }
 0xf2a   :  { %v1696_v36 = vadd.f32 %v1695_v11, %v1694_v61  ;;  %v2129_v61 = vpack.c.bf16 %v1889_v59, %v1888_v48  ;;  %v1873_v11 = vld [vmem:[%s3141_s3 + $0x68] sm:$0xff] }
 0xf2b   :  { %v1689_v46 = vrot.slane %v1688_v19, 1 }
 0xf2c   :  { %v1697_v53 = vrot.slane %v1696_v36, 1 }
 0xf2d   :  { %v1690_v62 = vadd.f32 %v1689_v46, %v1688_v19  ;;  %v1890_v19 = vld [vmem:[%s3141_s3 + $0xf0] sm:$0xff]  ;;  %v2131_v46 = vpack.c.bf16 %v1873_v11, %v1872_v5 }
 0xf2e   :  { %v1698_v4 = vadd.f32 %v1697_v53, %v1696_v36  ;;  %v1891_v36 = vld [vmem:[%s3141_s3 + $0xf8] sm:$0xff] }
 0xf2f   :  { %v1701_v8 = vadd.f32 %v2995_v0, %v1690_v62  ;;  %v2133_v53 = vpack.c.bf16 %v1891_v36, %v1890_v19  ;;  %v1874_v62 = vld [vmem:[%s3141_s3 + $0x70] sm:$0xff]  ;;  %v1857_v19 = vstv %s1981_s9 }
 0xf30   :  { %v1702_v6 = vadd.f32 %v2995_v0, %v1698_v4  ;;  %v1875_v4 = vld [vmem:[%s3141_s3 + $0x78] sm:$0xff] }
 0xf31   :  { %v1703_v15 = vadd.f32 %v1701_v8, %v2945_v58  ;;  %v3001_v1 = vadd.f32 %v1701_v8, %v2948_v50  ;;  %v2135_v8 = vpack.c.bf16 %v1875_v4, %v1874_v62 }
 0xf32   :  { %v1704_v16 = vadd.f32 %v1702_v6, %v2951_v54  ;;  %v3005_v17 = vadd.f32 %v1702_v6, %v2954_v47  ;;  %v1876_v47 = vld [vmem:[%s3141_s3 + $0x80] sm:$0xff] }
 0xf33   :  { %1707 = vrot.lane.b32.xlu1 %v1703_v15, %s2487_s7  ;;  %v1715_v23 = vrot.slane %v1703_v15, 4  ;;  %v2105_v12 = vpack.c.bf16 %v1877_v7, %v1876_v47 }
 0xf34   :  { %1709 = vrot.lane.b32.xlu0 %v1704_v16, %s2487_s7  ;;  %v1716_v24 = vrot.slane %v1704_v16, 4 }
 0xf35   :  { %2106 = vmatprep.subr.bf16.mxu1 %v2105_v12 }
 0xfa5   :  { %v1708_v20 = vpop.permute.xlu1 %1707 }
 0xfa6   :  { %v1710_v25 = vpop.permute.xlu0 %1709 }
 0xfa7   :  { %v1711_v63 = vsel %vm62_vm0, %v1708_v20, %v1710_v25  ;;  %v1712_v58 = vsel %vm62_vm0, %v1710_v25, %v1708_v20 }
 0xfa8   :  { %v1720_v50 = vsel %vm67_vm1, %v1711_v63, %v1716_v24  ;;  %v1719_v54 = vsel %vm67_vm1, %v1712_v58, %v1715_v23 }
 0xfa9   :  { %1721 = vmatprep.subr.mxu0 %v1720_v50 }
 0xfaa   :  { %1722 = vmatpush1.msra.mxu0 %v1719_v54 }
 0xfab   :  { %2064 = vmatmul.mubr.msk.f32.vlgmr.msra.gmra.mrb[24].mxu0 %vm72_vm2, %v2973_v49 }
 0xfac   :  { %1791 = vmatprep.mubr.f32.mxu0 %v2488_v2  ;;  %v1861_v2 = vld [vmem:[%s3141_s3 + $0x8] sm:$0xff] }
 0xfad   :  { %v2107_v49 = vpack.c.bf16 %v1861_v2, %v1860_v26 }
 0xfaf   :  { %2065 = vmatmul.mubr.msk.f32.gmra.mrb[26].mxu0 %vm72_vm2, %v2981_v14  ;;  %2108 = vmatpush3.bf16.msra.mxu1 %v2107_v49  ;;  %v1878_v14 = vld [vmem:[%s3141_s3 + $0x90] sm:$0xff]  ;;  %s49_s3 = sld [smem:[#allocation5]] }
 0xfb0   :  { %v2109_v28 = vpack.c.bf16 %v1879_v3, %v1878_v14 }
 0xfb2   :  { %2110 = vmatprep.subr.bf16.mxu1 %v2109_v28 }
 0xfb3   :  { %2112 = vmatpush3.bf16.msra.mxu1 %v2111_v31 }
 0xfb4   :  { %2114 = vmatprep.subr.bf16.mxu1 %v2113_v18 }
 0xfb7   :  { %2116 = vmatpush3.bf16.msra.mxu1 %v2115_v22 }
 0xfb8   :  { %2118 = vmatprep.subr.bf16.mxu1 %v2117_v43 }
 0xfbb   :  { %2120 = vmatpush3.bf16.msra.mxu1 %v2119_v39 }
 0xfbc   :  { %2122 = vmatprep.subr.bf16.mxu1 %v2121_v52 }
 0xfbf   :  { %2124 = vmatpush3.bf16.msra.mxu1 %v2123_v56 }
 0xfc0   :  { %2126 = vmatprep.subr.bf16.mxu1 %v2125_v57 }
 0xfc3   :  { %2128 = vmatpush3.bf16.msra.mxu1 %v2127_v60  ;;  %v1854_v60 = vstv %s49_s3 }
 0xfc4   :  { %2130 = vmatprep.subr.bf16.mxu1 %v2129_v61 }
 0xfc7   :  { %2132 = vmatpush3.bf16.msra.mxu1 %v2131_v46 }
 0xfc8   :  { %2134 = vmatprep.subr.bf16.mxu1 %v2133_v53 }
 0xfcb   :  { %2136 = vmatpush3.bf16.msra.mxu1 %v2135_v8  ;;  %v1892_v8 = vstv %s1982_s0 }
0x107e   :  { %v1787_v6 = vpop.f32.mrb[24].mxu0 }
0x107f   :  { %v2066_v15 = vmul.f32 -1.442695, %v1787_v6  ;;  %v1789_v16 = vpop.f32.mrb[25].mxu0 }
0x1080   :  { %v2067_v20 = vmul.f32 -1.442695, %v1789_v16 }
0x1081   :  { %2407 = vpow2.f32 %v2066_v15 }
0x1082   :  { %2409 = vpow2.f32 %v2067_v20  ;;  %v1793_v23 = vpop.f32.mrb[26].mxu0 }
0x1083   :  { %v2068_v24 = vmul.f32 -1.442695, %v1793_v23  ;;  %v1795_v25 = vpop.f32.mrb[27].mxu0 }
0x1084   :  { %v2069_v63 = vmul.f32 -1.442695, %v1795_v25 }
0x1085   :  { %2411 = vpow2.f32 %v2068_v24 }
0x1086   :  { %2413 = vpow2.f32 %v2069_v63 }
0x1087   :  { %2415 = vtanh.f32 %v1787_v6 }
0x1088   :  { %2417 = vtanh.f32 %v1789_v16 }
0x1089   :  { %2419 = vtanh.f32 %v1793_v23 }
0x108b   :  { %v2408_v58 = vpop.eup %2407 }
0x108c   :  { %v2410_v50 = vpop.eup %2409  ;;  %v1814_v54 = vadd.f32 1.0, %v2408_v58 }
0x108d   :  { %v1815_v47 = vadd.f32 1.0, %v2410_v50 }
0x108e   :  { %2421 = vrcp.f32 %v1814_v54 }
0x108f   :  { %v2412_v7 = vpop.eup %2411  ;;  %2423 = vrcp.f32 %v1815_v47 }
0x1090   :  { %v2414_v12 = vpop.eup %2413  ;;  %v1816_v26 = vadd.f32 1.0, %v2412_v7  ;;  %2425 = vtanh.f32 %v1795_v25 }
0x1091   :  { %v1817_v2 = vadd.f32 1.0, %v2414_v12  ;;  %v2416_v49 = vpop.eup %2415 }
0x1092   :  { %2427 = vrcp.f32 %v1816_v26  ;;  %v2418_v14 = vpop.eup %2417 }
0x1093   :  { %2429 = vrcp.f32 %v1817_v2  ;;  %v2420_v3 = vpop.eup %2419 }
0x1098   :  { %v2422_v28 = vpop.eup %2421 }
0x1099   :  { %v2424_v29 = vpop.eup %2423  ;;  %v1826_v35 = vmul.f32 %v2422_v28, %v2416_v49 }
0x109a   :  { %v2426_v30 = vpop.eup %2425  ;;  %v1827_v18 = vmul.f32 %v2424_v29, %v2418_v14 }
0x109b   :  { %v1830_v38 = vmul.f32 %v1826_v35, %v2987_v45 }
0x109c   :  { %v2428_v31 = vpop.eup %2427  ;;  %v1831_v43 = vmul.f32 %v1827_v18, %v2987_v45 }
0x109d   :  { %v2430_v10 = vpop.eup %2429  ;;  %v1828_v21 = vmul.f32 %v2428_v31, %v2420_v3 }
0x109e   :  { %v1829_v37 = vmul.f32 %v2430_v10, %v2426_v30 }
0x109f   :  { %v1832_v22 = vmul.f32 %v1828_v21, %v2985_v34 }
0x10a0   :  { %v1833_v32 = vmul.f32 %v1829_v37, %v2985_v34 }
0x10a1   :  { %v1834_v33 = vsel %vm204_vm3, %v1832_v22, 0.0 }
0x10a2   :  { %v1835_v9 = vadd.f32 %v1834_v33, %v1830_v38  ;;  %v1842_v44 = vsel %vm204_vm3, %v1833_v32, 0.0 }
0x10a3   :  { %v1843_v39 = vadd.f32 %v1842_v44, %v1831_v43 }
0x10a4   :  { %v1836_v40 = vrot.slane %v1835_v9, 4 }
0x10a5   :  { %v1844_v42 = vrot.slane %v1843_v39, 4 }
0x10a6   :  { %v1837_v51 = vadd.f32 %v1836_v40, %v1835_v9 }
0x10a7   :  { %v1845_v52 = vadd.f32 %v1844_v42, %v1843_v39 }
0x10a8   :  { %v1838_v13 = vrot.slane %v1837_v51, 2 }
0x10a9   :  { %v1846_v27 = vrot.slane %v1845_v52, 2 }
0x10aa   :  { %v1839_v56 = vadd.f32 %v1838_v13, %v1837_v51 }
0x10ab   :  { %v1847_v57 = vadd.f32 %v1846_v27, %v1845_v52 }
0x10ac   :  { %v1840_v41 = vrot.slane %v1839_v56, 1 }
0x10ad   :  { %v1848_v34 = vrot.slane %v1847_v57, 1 }
0x10ae   :  { %v1841_v55 = vadd.f32 %v1840_v41, %v1839_v56 }
0x10af   :  { %v1849_v45 = vadd.f32 %v1848_v34, %v1847_v57 }
0x10b0   :  { %v1850_v48 = vadd.f32 %v1841_v55, %v2995_v0 }
0x10b1   :  { %v1851_v59 = vadd.f32 %v1849_v45, %v2995_v0 }
0x10b2   :  { %v1852_v61 = vadd.f32 %v1850_v48, %v3001_v1 }
0x10b3   :  { %v1853_v5 = vadd.f32 %v1851_v59, %v3005_v17 }
0x10b4   :  { %v1855_v11 = vmul.f32 %v1854_v60, %v1852_v61 }
0x10b5   :  { %v1856_v36 = vmul.f32 %v1854_v60, %v1853_v5 }
0x10b6   :  { %v1858_v53 = vadd.f32 %v1857_v19, %v1855_v11 }
0x10b7   :  { %v1859_v46 = vadd.f32 %v1857_v19, %v1856_v36 }
0x10b9   :  { %1957 = vmatprep.mubr.f32.mxu1 %v1859_v46 }
0x10ba   :  { %1958 = vmatmul.mubr.f32.vlgmr.msra.gmra.mrb[16].mxu1 %v1858_v53 }
0x118d   :  { %v2102_v62 = vpop.f32.mrb[16].mxu1 }
0x118e   :  { %v2103_v4 = vpop.f32.mrb[17].mxu1 }
0x118f   :  { %v2104_v6 = vadd.f32 %v2103_v4, %v2102_v62 }
0x1191   :  { %v1960_v0 = vadd.f32 %v2104_v6, %v1892_v8 }
0x1193   :  { %1964 = vst.msk [vmem:[#allocation7] sm:$0x1] %vm1963_vm4, %v1960_v0 }
0x1194   :  { %2468 = shalt.err (!%p2465_p0)
}
0x1195   :  { %s2469_s16 = scalar_lea.hbm %s3144_s6, 16 }
0x1196   :  { %p2470_p1 = scmp.ne.s32.totalorder %s3144_s6, %s2469_s16  ;;  %p2473_p2 = scmp.lt.u32.totalorder %s2469_s16, %s3144_s6 }
0x1198   :  { %p2475_p3 = pnand %p2473_p2, %p2470_p1 }
0x119a   :  { %2478 = shalt.err (!%p2475_p3)
}
0x119b   :  { %1974 = dma.vmem_to_hbm [thread:$0]  %s1972_s11, 16, %s3144_s6, [#allocation3]  }
0x119c   :  { %2483 = dma.done.wait [#allocation3], 16  }
0x119d   :  { %2484 = vsyncadd [#allocation3], 4294967280 }
0x119e   :  { %1978 = vsyncpa [#allocation3], 1 }
0x119f   :  { %1979 = vsyncpa [#allocation4], 1 }
0x11a0   :  { %1980 = vsyncpa [#allocation6], 1 }

</bundles_post_ra>
